<compile_context>
chip_gen: v5e
topology: v5e:2x2
jax: 0.10.0
libtpu: 0.0.40
codegen_flags: <defaults>
</compile_context>

<pallas_src>
import jax
import jax.numpy as jnp
from jax import lax
from jax.experimental import pallas as pl
from jax.experimental.pallas import tpu as pltpu


# a[m, k] contracted with w[n, k] -> [m, n]  (x @ W^T, PyTorch [out, in] layout)
_DIMS_NT = (((1,), (1,)), ((), ()))
# a[m, k] contracted with w[k, n] -> [m, n]  (pre-transposed down-proj weights)
_DIMS_NN = (((1,), (0,)), ((), ()))


def _mm(a, w_ref, dims):
    return lax.dot_general(a, w_ref[...], dims,
                           preferred_element_type=jnp.float32)


def _mlp_delta_kernel(x_ref, w1_ref, dw1_ref, w3_ref, dw3_ref,
                      w2t_ref, dw2t_ref, o_ref, acc_ref):
    """Grid = (token tiles i, intermediate tiles j); j is a reduction axis for
    the down-projection (f32 VMEM accumulator, init at j==0, store at last j)."""
    j = pl.program_id(1)

    @pl.when(j == 0)
    def _():
        acc_ref[...] = jnp.zeros_like(acc_ref)

    x = x_ref[...]                                              # (tm, H) bf16
    gate = _mm(x, w1_ref, _DIMS_NT) + _mm(x, dw1_ref, _DIMS_NT)  # (tm, ti) f32
    up = _mm(x, w3_ref, _DIMS_NT) + _mm(x, dw3_ref, _DIMS_NT)    # (tm, ti) f32
    h = (jax.nn.silu(gate) * up).astype(x.dtype)                 # (tm, ti) bf16

    acc_ref[...] += _mm(h, w2t_ref, _DIMS_NN) + _mm(h, dw2t_ref, _DIMS_NN)

    @pl.when(j == pl.num_programs(1) - 1)
    def _():
        o_ref[...] = acc_ref[...].astype(o_ref.dtype)


def _mlp_folded_kernel(x_ref, w1_ref, w3_ref, w2t_ref, o_ref, acc_ref):
    """Same as above with W+dW folded outside the kernel (3 matmuls)."""
    j = pl.program_id(1)

    @pl.when(j == 0)
    def _():
        acc_ref[...] = jnp.zeros_like(acc_ref)

    x = x_ref[...]
    gate = _mm(x, w1_ref, _DIMS_NT)
    up = _mm(x, w3_ref, _DIMS_NT)
    h = (jax.nn.silu(gate) * up).astype(x.dtype)
    acc_ref[...] += _mm(h, w2t_ref, _DIMS_NN)

    @pl.when(j == pl.num_programs(1) - 1)
    def _():
        o_ref[...] = acc_ref[...].astype(o_ref.dtype)


def _round_up(x, m):
    return (x + m - 1) // m * m


def _tpu_config():
    """Returns (is_v7, vmem_capacity_bytes, tm_pref, ti_pref)."""
    kind = ""
    try:
        kind = jax.devices()[0].device_kind.lower()
    except Exception:  # pragma: no cover
        pass
    vmem_cap = None
    try:
        vmem_cap = int(pltpu.get_tpu_info().vmem_capacity_bytes)
    except Exception:  # pragma: no cover
        pass

    is_v7 = ("v7" in kind) or ("7x" in kind)
    if vmem_cap is None:
        vmem_cap = 64 * 2**20 if is_v7 else 128 * 2**20

    if is_v7:
        # 64 MiB physical VMEM per TC; ridge ~310 FLOPs/byte.
        tm_pref, ti_pref = 384, 256
    elif "v6" in kind:
        # 128 MiB VMEM; ridge ~650 FLOPs/byte -> need big tm.
        tm_pref, ti_pref = 512, 512
    elif "v5" in kind:
        tm_pref, ti_pref = 256, 512
    else:
        # Unknown / older generation: conservative.
        tm_pref, ti_pref = 256, 256
    return is_v7, vmem_cap, tm_pref, ti_pref


def _pick_ti(intermediate_dim, pref):
    """Largest lane-aligned tile of I (<= pref preferred) that divides I."""
    for cand in (pref, 512, 256, 128):
        if cand <= intermediate_dim and intermediate_dim % cand == 0:
            return cand
    return intermediate_dim  # small / odd I: use the full dimension


def _footprint_bytes(tm, ti, hidden_dim, n_weight_streams):
    blk_x = tm * hidden_dim * 2
    blk_w = ti * hidden_dim * 2
    blk_o = tm * hidden_dim * 2
    acc = tm * hidden_dim * 4
    # BlockSpec double-buffers every streamed operand.
    return 2 * (blk_x + n_weight_streams * blk_w + blk_o) + acc


def delta_weight_linear_fwd(hidden_states, params, *, tm=None, ti=None,
                            fold_delta=False):
    """hidden_states: [..., H] bf16.
    params (PyTorch [out, in] layout, bf16):
      w1/dw1 [I, H], w3/dw3 [I, H], w2/dw2 [H, I]."""
    orig_shape = hidden_states.shape
    H = orig_shape[-1]
    x = hidden_states.reshape(-1, H)
    T = x.shape[0]
    I = params["w1"].shape[0]

    is_v7, vmem_cap, tm_pref, ti_pref = _tpu_config()
    n_w = 3 if fold_delta else 6

    # ---- token tile: generation preference, clamped so small T isn't over-padded
    T128 = _round_up(T, 128)
    if tm is None:
        tm = min(tm_pref, T128)
        # v7x: keep both TensorCores busy when there is more than one tile of work.
        if is_v7 and T128 >= 256 and T128 <= tm:
            tm = max(128, _round_up(T128 // 2, 128))
    tm = min(tm, T128)

    # ---- intermediate tile
    if ti is None:
        ti = _pick_ti(I, ti_pref)
    assert I % ti == 0

    # ---- shrink tiles until the double-buffered footprint fits in ~85% of VMEM
    budget = int(0.85 * vmem_cap)
    while _footprint_bytes(tm, ti, H, n_w) > budget:
        smaller_ti = _pick_ti(I, ti // 2) if ti > 128 else ti
        if smaller_ti < ti:
            ti = smaller_ti
            continue
        if tm > 128:
            tm -= 128
            continue
        break

    # ---- ragged token counts: zero-pad to a multiple of the token tile
    num_token_tiles = pl.cdiv(T, tm)
    T_pad = num_token_tiles * tm
    if T_pad != T:
        x = jnp.pad(x, ((0, T_pad - T), (0, 0)))

    grid = (num_token_tiles, I // ti)

    # ---- weights: optionally fold W+dW (f32 sum, single bf16 cast); always
    #      pre-transpose the down-proj weights to [I, H] so every weight stream
    #      is a contiguous (ti, H) slab.  (In production, store them this way.)
    if fold_delta:
        def fold(a, b):
            return (a.astype(jnp.float32) + b.astype(jnp.float32)).astype(a.dtype)
        w1 = fold(params["w1"], params["dw1"])
        w3 = fold(params["w3"], params["dw3"])
        w2t = jnp.swapaxes(fold(params["w2"], params["dw2"]), 0, 1)
        weight_args = (w1, w3, w2t)
        kernel = _mlp_folded_kernel
    else:
        w2t = jnp.swapaxes(params["w2"], 0, 1)
        dw2t = jnp.swapaxes(params["dw2"], 0, 1)
        weight_args = (params["w1"], params["dw1"],
                       params["w3"], params["dw3"], w2t, dw2t)
        kernel = _mlp_delta_kernel

    # ---- VMEM limit: ~1.2x the (already double-buffered) footprint, capped at
    #      physical capacity.  No artificial 64 MiB cap.
    footprint = _footprint_bytes(tm, ti, H, n_w)
    vmem_limit = int(min(max(footprint + footprint // 5, 32 * 2**20), vmem_cap))

    # ---- cost estimate (weights are re-streamed once per token tile)
    cost = pl.CostEstimate(
        flops=2 * n_w * T_pad * H * I,
        transcendentals=T_pad * I,
        bytes_accessed=num_token_tiles * n_w * I * H * 2 + 2 * T_pad * H * 2,
    )

    w_spec = pl.BlockSpec((ti, H), lambda i, j: (j, 0))
    grid_spec = pltpu.PrefetchScalarGridSpec(
        num_scalar_prefetch=0,
        grid=grid,
        in_specs=[pl.BlockSpec((tm, H), lambda i, j: (i, 0))]  # x
                 + [w_spec] * n_w,                             # all weight slabs
        out_specs=pl.BlockSpec((tm, H), lambda i, j: (i, 0)),
        scratch_shapes=[pltpu.VMEM((tm, H), jnp.float32)],
    )

    out = pl.pallas_call(
        kernel,
        out_shape=jax.ShapeDtypeStruct((T_pad, H), x.dtype),
        grid_spec=grid_spec,
        compiler_params=pltpu.CompilerParams(
            dimension_semantics=("parallel", "arbitrary"),
            vmem_limit_bytes=vmem_limit),
        cost_estimate=cost,
    )(x, *weight_args)

    return out[:T].reshape(orig_shape)


def reference_fwd(hidden_states, p):
    """Pure-JAX reference (f32 accumulation, bf16 h) for correctness checking."""
    H = hidden_states.shape[-1]
    x = hidden_states.astype(jnp.float32).reshape(-1, H)

    def mm(a, w):
        return a @ w.astype(jnp.float32).T

    up = mm(x, p["w3"]) + mm(x, p["dw3"])
    gate = mm(x, p["w1"]) + mm(x, p["dw1"])
    h = (jax.nn.silu(gate) * up).astype(jnp.bfloat16).astype(jnp.float32)
    out = mm(h, p["w2"]) + mm(h, p["dw2"])
    return out.astype(hidden_states.dtype).reshape(hidden_states.shape)


if __name__ == "__main__":
    # Small shapes consistent with the module: batch=2, seq=8, H=128, I=256.
    batch, seq = 2, 8
    hidden_dim, intermediate_dim = 128, 256

    key = jax.random.PRNGKey(0)
    keys = jax.random.split(key, 7)

    def make_w(k, shape):
        return (0.02 * jax.random.normal(k, shape, jnp.float32)).astype(jnp.bfloat16)

    params = {
        "w1": make_w(keys[0], (intermediate_dim, hidden_dim)),
        "w2": make_w(keys[1], (hidden_dim, intermediate_dim)),
        "w3": make_w(keys[2], (intermediate_dim, hidden_dim)),
        "dw1": make_w(keys[3], (intermediate_dim, hidden_dim)),
        "dw2": make_w(keys[4], (hidden_dim, intermediate_dim)),
        "dw3": make_w(keys[5], (intermediate_dim, hidden_dim)),
    }
    hidden_states = jax.random.normal(
        keys[6], (batch, seq, hidden_dim), jnp.float32).astype(jnp.bfloat16)

    ref = reference_fwd(hidden_states, params)

    # Exact two-matmul semantics (default).
    out = delta_weight_linear_fwd(hidden_states, params)
    out = jax.block_until_ready(out)
    assert out.shape == hidden_states.shape
    assert out.dtype == jnp.bfloat16
    err = jnp.max(jnp.abs(out.astype(jnp.float32) - ref.astype(jnp.float32)))
    assert float(err) < 5e-2, f"mismatch vs reference: {float(err)}"

    # Folded W+dW variant (half the weight traffic; tiny bf16 fold drift).
    out_f = delta_weight_linear_fwd(hidden_states, params, fold_delta=True)
    out_f = jax.block_until_ready(out_f)
    err_f = jnp.max(jnp.abs(out_f.astype(jnp.float32) - ref.astype(jnp.float32)))
    assert float(err_f) < 1e-1, f"folded mismatch vs reference: {float(err_f)}"

    print("KERNEL_OK")
</pallas_src>

<mosaic_0001>
module attributes {stable_mosaic.version = 11 : i64} {
  func.func @_mlp_delta_kernel(%arg0: i32, %arg1: i32, %arg2: memref<128x128xbf16, #tpu.memory_space<vmem>>, %arg3: memref<256x128xbf16, #tpu.memory_space<vmem>>, %arg4: memref<256x128xbf16, #tpu.memory_space<vmem>>, %arg5: memref<256x128xbf16, #tpu.memory_space<vmem>>, %arg6: memref<256x128xbf16, #tpu.memory_space<vmem>>, %arg7: memref<256x128xbf16, #tpu.memory_space<vmem>>, %arg8: memref<256x128xbf16, #tpu.memory_space<vmem>>, %arg9: memref<128x128xbf16, #tpu.memory_space<vmem>>, %arg10: memref<128x128xf32, #tpu.memory_space<vmem>>) attributes {dimension_semantics = [#tpu.dimension_semantics<parallel>, #tpu.dimension_semantics<arbitrary>], iteration_bounds = array<i64: 1, 1>, scalar_prefetch = 0 : i64, scratch_operands = 1 : i64, tpu.core_type = #tpu.core_type<tc>, window_params = [{transform_indices = @transform_0, window_bounds = array<i64: 128, 128>}, {transform_indices = @transform_1, window_bounds = array<i64: 256, 128>}, {transform_indices = @transform_2, window_bounds = array<i64: 256, 128>}, {transform_indices = @transform_3, window_bounds = array<i64: 256, 128>}, {transform_indices = @transform_4, window_bounds = array<i64: 256, 128>}, {transform_indices = @transform_5, window_bounds = array<i64: 256, 128>}, {transform_indices = @transform_6, window_bounds = array<i64: 256, 128>}, {transform_indices = @transform_7, window_bounds = array<i64: 128, 128>}]} {
    %c0_i32 = arith.constant 0 : i32
    %0 = arith.cmpi eq, %arg1, %c0_i32 : i32
    %1 = arith.extui %0 : i1 to i32
    %c0_i32_0 = arith.constant 0 : i32
    %2 = arith.cmpi ne, %1, %c0_i32_0 : i32
    scf.if %2 {
      %cst_26 = arith.constant 0.000000e+00 : f32
      %33 = vector.broadcast %cst_26 : f32 to vector<128x128xf32>
      %c0_27 = arith.constant 0 : index
      %c0_28 = arith.constant 0 : index
      %34 = vector.load %arg10[%c0_27, %c0_28] : memref<128x128xf32, #tpu.memory_space<vmem>>, vector<128x128xf32>
      tpu.vector_store %arg10[%c0_27, %c0_28], %33 {strides = array<i32>} : memref<128x128xf32, #tpu.memory_space<vmem>>, vector<128x128xf32>,
    } else {
    }
    %c0 = arith.constant 0 : index
    %c0_1 = arith.constant 0 : index
    %3 = vector.load %arg2[%c0, %c0_1] : memref<128x128xbf16, #tpu.memory_space<vmem>>, vector<128x128xbf16>
    %c0_2 = arith.constant 0 : index
    %c0_3 = arith.constant 0 : index
    %4 = vector.load %arg3[%c0_2, %c0_3] : memref<256x128xbf16, #tpu.memory_space<vmem>>, vector<256x128xbf16>
    %cst = arith.constant dense<0.000000e+00> : vector<128x256xf32>
    %5 = tpu.matmul %3, %4, %cst {dimension_numbers = #tpu.dot_dimension_numbers<[1], [1], [0], [0], [0, 0, 1, 0], [], []>} : vector<128x128xbf16>, vector<256x128xbf16>, vector<128x256xf32> -> vector<128x256xf32>
    %c0_4 = arith.constant 0 : index
    %c0_5 = arith.constant 0 : index
    %6 = vector.load %arg4[%c0_4, %c0_5] : memref<256x128xbf16, #tpu.memory_space<vmem>>, vector<256x128xbf16>
    %cst_6 = arith.constant dense<0.000000e+00> : vector<128x256xf32>
    %7 = tpu.matmul %3, %6, %cst_6 {dimension_numbers = #tpu.dot_dimension_numbers<[1], [1], [0], [0], [0, 0, 1, 0], [], []>} : vector<128x128xbf16>, vector<256x128xbf16>, vector<128x256xf32> -> vector<128x256xf32>
    %8 = arith.addf %5, %7 : vector<128x256xf32>
    %c0_7 = arith.constant 0 : index
    %c0_8 = arith.constant 0 : index
    %9 = vector.load %arg5[%c0_7, %c0_8] : memref<256x128xbf16, #tpu.memory_space<vmem>>, vector<256x128xbf16>
    %cst_9 = arith.constant dense<0.000000e+00> : vector<128x256xf32>
    %10 = tpu.matmul %3, %9, %cst_9 {dimension_numbers = #tpu.dot_dimension_numbers<[1], [1], [0], [0], [0, 0, 1, 0], [], []>} : vector<128x128xbf16>, vector<256x128xbf16>, vector<128x256xf32> -> vector<128x256xf32>
    %c0_10 = arith.constant 0 : index
    %c0_11 = arith.constant 0 : index
    %11 = vector.load %arg6[%c0_10, %c0_11] : memref<256x128xbf16, #tpu.memory_space<vmem>>, vector<256x128xbf16>
    %cst_12 = arith.constant dense<0.000000e+00> : vector<128x256xf32>
    %12 = tpu.matmul %3, %11, %cst_12 {dimension_numbers = #tpu.dot_dimension_numbers<[1], [1], [0], [0], [0, 0, 1, 0], [], []>} : vector<128x128xbf16>, vector<256x128xbf16>, vector<128x256xf32> -> vector<128x256xf32>
    %13 = arith.addf %10, %12 : vector<128x256xf32>
    %14 = arith.negf %8 : vector<128x256xf32>
    %15 = math.exp %14 : vector<128x256xf32>
    %cst_13 = arith.constant 1.000000e+00 : f32
    %16 = vector.broadcast %cst_13 : f32 to vector<128x256xf32>
    %17 = arith.addf %16, %15 : vector<128x256xf32>
    %18 = arith.divf %16, %17 : vector<128x256xf32>
    %19 = arith.mulf %8, %18 : vector<128x256xf32>
    %20 = arith.mulf %19, %13 : vector<128x256xf32>
    %21 = arith.truncf %20 : vector<128x256xf32> to vector<128x256xbf16>
    %c0_14 = arith.constant 0 : index
    %c0_15 = arith.constant 0 : index
    %22 = vector.load %arg10[%c0_14, %c0_15] : memref<128x128xf32, #tpu.memory_space<vmem>>, vector<128x128xf32>
    %c0_16 = arith.constant 0 : index
    %c0_17 = arith.constant 0 : index
    %23 = vector.load %arg7[%c0_16, %c0_17] : memref<256x128xbf16, #tpu.memory_space<vmem>>, vector<256x128xbf16>
    %cst_18 = arith.constant dense<0.000000e+00> : vector<128x128xf32>
    %24 = tpu.matmul %21, %23, %cst_18 {dimension_numbers = #tpu.dot_dimension_numbers<[1], [0], [0], [1], [0, 0, 1, 1], [], []>} : vector<128x256xbf16>, vector<256x128xbf16>, vector<128x128xf32> -> vector<128x128xf32>
    %c0_19 = arith.constant 0 : index
    %c0_20 = arith.constant 0 : index
    %25 = vector.load %arg8[%c0_19, %c0_20] : memref<256x128xbf16, #tpu.memory_space<vmem>>, vector<256x128xbf16>
    %cst_21 = arith.constant dense<0.000000e+00> : vector<128x128xf32>
    %26 = tpu.matmul %21, %25, %cst_21 {dimension_numbers = #tpu.dot_dimension_numbers<[1], [0], [0], [1], [0, 0, 1, 1], [], []>} : vector<128x256xbf16>, vector<256x128xbf16>, vector<128x128xf32> -> vector<128x128xf32>
    %27 = arith.addf %24, %26 : vector<128x128xf32>
    %28 = arith.addf %22, %27 : vector<128x128xf32>
    %c0_22 = arith.constant 0 : index
    %c0_23 = arith.constant 0 : index
    %29 = vector.load %arg10[%c0_22, %c0_23] : memref<128x128xf32, #tpu.memory_space<vmem>>, vector<128x128xf32>
    tpu.vector_store %arg10[%c0_22, %c0_23], %28 {strides = array<i32>} : memref<128x128xf32, #tpu.memory_space<vmem>>, vector<128x128xf32>,
    %c0_i32_24 = arith.constant 0 : i32
    %30 = arith.cmpi eq, %arg1, %c0_i32_24 : i32
    %31 = arith.extui %30 : i1 to i32
    %c0_i32_25 = arith.constant 0 : i32
    %32 = arith.cmpi ne, %31, %c0_i32_25 : i32
    scf.if %32 {
      %c0_26 = arith.constant 0 : index
      %c0_27 = arith.constant 0 : index
      %33 = vector.load %arg10[%c0_26, %c0_27] : memref<128x128xf32, #tpu.memory_space<vmem>>, vector<128x128xf32>
      %34 = arith.truncf %33 : vector<128x128xf32> to vector<128x128xbf16>
      %c0_28 = arith.constant 0 : index
      %c0_29 = arith.constant 0 : index
      %35 = vector.load %arg9[%c0_28, %c0_29] : memref<128x128xbf16, #tpu.memory_space<vmem>>, vector<128x128xbf16>
      tpu.vector_store %arg9[%c0_28, %c0_29], %34 {strides = array<i32>} : memref<128x128xbf16, #tpu.memory_space<vmem>>, vector<128x128xbf16>,
    } else {
    }
    return
  }
  func.func @transform_0(%arg0: i32, %arg1: i32) -> (i32, i32) {
    %c0_i32 = arith.constant 0 : i32
    %c0_i32_0 = arith.constant 0 : i32
    return %arg0, %c0_i32 : i32, i32
  }
  func.func @transform_1(%arg0: i32, %arg1: i32) -> (i32, i32) {
    %c0_i32 = arith.constant 0 : i32
    %c0_i32_0 = arith.constant 0 : i32
    return %arg1, %c0_i32 : i32, i32
  }
  func.func @transform_2(%arg0: i32, %arg1: i32) -> (i32, i32) {
    %c0_i32 = arith.constant 0 : i32
    %c0_i32_0 = arith.constant 0 : i32
    return %arg1, %c0_i32 : i32, i32
  }
  func.func @transform_3(%arg0: i32, %arg1: i32) -> (i32, i32) {
    %c0_i32 = arith.constant 0 : i32
    %c0_i32_0 = arith.constant 0 : i32
    return %arg1, %c0_i32 : i32, i32
  }
  func.func @transform_4(%arg0: i32, %arg1: i32) -> (i32, i32) {
    %c0_i32 = arith.constant 0 : i32
    %c0_i32_0 = arith.constant 0 : i32
    return %arg1, %c0_i32 : i32, i32
  }
  func.func @transform_5(%arg0: i32, %arg1: i32) -> (i32, i32) {
    %c0_i32 = arith.constant 0 : i32
    %c0_i32_0 = arith.constant 0 : i32
    return %arg1, %c0_i32 : i32, i32
  }
  func.func @transform_6(%arg0: i32, %arg1: i32) -> (i32, i32) {
    %c0_i32 = arith.constant 0 : i32
    %c0_i32_0 = arith.constant 0 : i32
    return %arg1, %c0_i32 : i32, i32
  }
  func.func @transform_7(%arg0: i32, %arg1: i32) -> (i32, i32) {
    %c0_i32 = arith.constant 0 : i32
    %c0_i32_0 = arith.constant 0 : i32
    return %arg0, %c0_i32 : i32, i32
  }
}

</mosaic_0001>

<bundles_post_ra>
// kernel: tpu_custom_call.1
= control target key start
LH: loop header
LB: loop body
LE: loop exit
PB: predicated region body
PF: predicated region fallthrough
CT: control target
= control target key end

     0   :  { %12 = vsyncpa [#allocation4], 0  ;;  %s4651_s0 = inlined_call_operand.hbm [shape: bf16[128,128], index: 0, kind: input, shape index: {}]   ;;  %s4652_s1 = inlined_call_operand.hbm [shape: bf16[256,128], index: 1, kind: input, shape index: {}]   ;;  %s4653_s2 = inlined_call_operand.hbm [shape: bf16[256,128], index: 2, kind: input, shape index: {}]   ;;  %s4654_s3 = inlined_call_operand.hbm [shape: bf16[256,128], index: 3, kind: input, shape index: {}]   ;;  %s4655_s4 = inlined_call_operand.hbm [shape: bf16[256,128], index: 4, kind: input, shape index: {}]   ;;  %s4656_s5 = inlined_call_operand.hbm [shape: bf16[256,128], index: 5, kind: input, shape index: {}]   ;;  %s4657_s6 = inlined_call_operand.hbm [shape: bf16[256,128], index: 6, kind: input, shape index: {}]   ;;  %s4658_s7 = inlined_call_operand.hbm [shape: bf16[128,128], index: 7, kind: output, shape index: {}]  }
   0x1   :  { %13 = vsyncpa [#allocation7], 0 }
   0x2   :  { %14 = vsyncpa [#allocation10], 0 }
   0x3   :  { %15 = vsyncpa [#allocation13], 0 }
   0x4   :  { %16 = vsyncpa [#allocation5], 0  ;;  %s34_s26 = sshll.u32 %s4652_s1, 4  ;;  %s3324_s27 = smov [#allocation6]   ;;  %s35_s26 = int_to_ptr.hbm [resolvable:$true] %s34_s26 }
   0x5   :  { %s36_s28 = sshll.u32 %s3324_s27, 4  ;;  %s60_s8 = sshll.u32 %s4654_s3, 4  ;;  %s37_s28 = int_to_ptr.vmem [resolvable:$true] %s36_s28  ;;  %s61_s8 = int_to_ptr.hbm [resolvable:$true] %s60_s8 }
   0x6   :  { %s3325_s9 = smov 64   ;;  %s3326_s10 = smov 4  }
   0x7   :  { %42 = dma.hbm_to_vmem [thread:$0]  %s35_s26, 2048, %s37_s28, [#allocation7], %s3325_s9, %s3325_s9, %s3326_s10  }
   0x8   :  { %s3327_s11 = smov [#allocation9]   ;;  %s86_s1 = sshll.u32 %s4656_s5, 4  ;;  %s87_s1 = int_to_ptr.hbm [resolvable:$true] %s86_s1 }
   0x9   :  { %s62_s12 = sshll.u32 %s3327_s11, 4  ;;  %s21_s16 = sshll.u32 %s4651_s0, 4  ;;  %s63_s12 = int_to_ptr.vmem [resolvable:$true] %s62_s12  ;;  %s22_s16 = int_to_ptr.hbm [resolvable:$true] %s21_s16 }
   0xa   :  { %68 = dma.hbm_to_vmem [thread:$0]  %s61_s8, 2048, %s63_s12, [#allocation10], %s3325_s9, %s3325_s9, %s3326_s10  }
   0xb   :  { %s3328_s17 = smov [#allocation12]   ;;  %s3329_s19 = smov [#allocation3]  }
   0xc   :  { %s88_s18 = sshll.u32 %s3328_s17, 4  ;;  %s23_s5 = sshll.u32 %s3329_s19, 4  ;;  %s89_s18 = int_to_ptr.vmem [resolvable:$true] %s88_s18  ;;  %s24_s5 = int_to_ptr.vmem [resolvable:$true] %s23_s5 }
   0xd   :  { %94 = dma.hbm_to_vmem [thread:$0]  %s87_s1, 2048, %s89_s18, [#allocation13], %s3325_s9, %s3325_s9, %s3326_s10  }
   0xe   :  { %s47_s22 = sshll.u32 %s4653_s2, 4  ;;  %s73_s24 = sshll.u32 %s4655_s4, 4  ;;  %s48_s22 = int_to_ptr.hbm [resolvable:$true] %s47_s22  ;;  %s74_s24 = int_to_ptr.hbm [resolvable:$true] %s73_s24 }
   0xf   :  { %29 = dma.hbm_to_vmem [thread:$0]  %s22_s16, 1024, %s24_s5, [#allocation4], %s3325_s9, %s3325_s9, %s3326_s10  }
  0x10   :  { %s3330_s25 = smov [#allocation8]   ;;  %s3331_s27 = smov [#allocation11]  }
  0x11   :  { %s49_s26 = sshll.u32 %s3330_s25, 4  ;;  %s75_s2 = sshll.u32 %s3331_s27, 4  ;;  %s50_s26 = int_to_ptr.vmem [resolvable:$true] %s49_s26  ;;  %s76_s2 = int_to_ptr.vmem [resolvable:$true] %s75_s2 }
  0x12   :  { %55 = dma.hbm_to_vmem [thread:$0]  %s48_s22, 2048, %s50_s26, [#allocation7], %s3325_s9, %s3325_s9, %s3326_s10  }
  0x13   :  { %s99_s30 = sshll.u32 %s4657_s6, 4  ;;  %s3332_s4 = smov [#allocation14]   ;;  %s100_s30 = int_to_ptr.hbm [resolvable:$true] %s99_s30 }
  0x14   :  { %81 = dma.hbm_to_vmem [thread:$0]  %s74_s24, 2048, %s76_s2, [#allocation10], %s3325_s9, %s3325_s9, %s3326_s10  }
  0x15   :  { %s101_s8 = sshll.u32 %s3332_s4, 4  ;;  %s102_s8 = int_to_ptr.vmem [resolvable:$true] %s101_s8 }
  0x16   :  { %107 = dma.hbm_to_vmem [thread:$0]  %s100_s30, 2048, %s102_s8, [#allocation13], %s3325_s9, %s3325_s9, %s3326_s10  }
  0x17   :  { %3314 = dma.done.wait [#allocation4], 1024  }
  0x18   :  { %3315 = vsyncadd [#allocation4], 4294966272 }
  0x19   :  { %3316 = dma.done.wait [#allocation7], 4096  }
  0x1a   :  { %3317 = vsyncadd [#allocation7], 4294963200 }
  0x1b   :  { %3318 = dma.done.wait [#allocation10], 4096  }
  0x1c   :  { %3319 = vsyncadd [#allocation10], 4294963200 }
  0x1d   :  { %3320 = dma.done.wait [#allocation13], 4096  }
  0x1e   :  { %3321 = vsyncadd [#allocation13], 4294963200  ;;  %v2864_v0 = vld [vmem:[#allocation8 + $0x38] sm:$0xff]  ;;  %v2863_v4 = vld [vmem:[#allocation8 + $0x30] sm:$0xff]  ;;  %s3333_s6 = smov [#allocation15]   ;;  %s2369_s14 = sshll.u32 %s4658_s7, 4  ;;  %s2370_s14 = int_to_ptr.hbm [resolvable:$true] %s2369_s14 }
  0x1f   :  { %v2872_v1 = vld [vmem:[#allocation8 + $0x78] sm:$0xff]  ;;  %380 = vmatpush.bf16.xpose.msra.mxu0 %v2864_v0  ;;  %v2871_v5 = vld [vmem:[#allocation8 + $0x70] sm:$0xff]  ;;  %v2862_v8 = vld [vmem:[#allocation8 + $0x28] sm:$0xff]  ;;  %s2367_s11 = sshll.u32 %s3333_s6, 4  ;;  %s2368_s11 = int_to_ptr.vmem [resolvable:$true] %s2367_s11 }
  0x20   :  { %v2848_v2 = vld [vmem:[#allocation6 + $0x38] sm:$0xff]  ;;  %429 = vmatpush.bf16.xpose.msra.mxu1 %v2872_v1  ;;  %v2847_v6 = vld [vmem:[#allocation6 + $0x30] sm:$0xff]  ;;  %v2870_v9 = vld [vmem:[#allocation8 + $0x68] sm:$0xff] }
  0x21   :  { %v2856_v3 = vld [vmem:[#allocation6 + $0x78] sm:$0xff]  ;;  %574 = vmatpush.bf16.xpose.msra.mxu2 %v2848_v2  ;;  %v2855_v7 = vld [vmem:[#allocation6 + $0x70] sm:$0xff]  ;;  %v2846_v10 = vld [vmem:[#allocation6 + $0x28] sm:$0xff] }
  0x22   :  { %623 = vmatpush.bf16.xpose.msra.mxu3 %v2856_v3  ;;  %v2854_v11 = vld [vmem:[#allocation6 + $0x68] sm:$0xff]  ;;  %v2861_v12 = vld [vmem:[#allocation8 + $0x20] sm:$0xff]  ;;  %v2860_v16 = vld [vmem:[#allocation8 + $0x18] sm:$0xff] }
  0x23   :  { %v2869_v13 = vld [vmem:[#allocation8 + $0x60] sm:$0xff]  ;;  %v2868_v17 = vld [vmem:[#allocation8 + $0x58] sm:$0xff]  ;;  %v2859_v20 = vld [vmem:[#allocation8 + $0x10] sm:$0xff] }
  0x24   :  { %v2845_v14 = vld [vmem:[#allocation6 + $0x20] sm:$0xff]  ;;  %v2844_v18 = vld [vmem:[#allocation6 + $0x18] sm:$0xff]  ;;  %v2867_v21 = vld [vmem:[#allocation8 + $0x50] sm:$0xff] }
  0x25   :  { %v2853_v15 = vld [vmem:[#allocation6 + $0x60] sm:$0xff]  ;;  %v2852_v19 = vld [vmem:[#allocation6 + $0x58] sm:$0xff]  ;;  %v2843_v22 = vld [vmem:[#allocation6 + $0x10] sm:$0xff] }
  0x26   :  { %v2851_v23 = vld [vmem:[#allocation6 + $0x50] sm:$0xff]  ;;  %v2858_v24 = vld [vmem:[#allocation8 + $0x8] sm:$0xff]  ;;  %v2857_v28 = vld [vmem:[#allocation8] sm:$0xff] }
  0x27   :  { %381 = vmatpush.bf16.xpose.msra.mxu0 %v2863_v4  ;;  %v2866_v25 = vld [vmem:[#allocation8 + $0x48] sm:$0xff]  ;;  %v2865_v29 = vld [vmem:[#allocation8 + $0x40] sm:$0xff]  ;;  %v2880_v32 = vld [vmem:[#allocation9 + $0x38] sm:$0xff] }
  0x28   :  { %430 = vmatpush.bf16.xpose.msra.mxu1 %v2871_v5  ;;  %v2842_v26 = vld [vmem:[#allocation6 + $0x8] sm:$0xff]  ;;  %v2841_v30 = vld [vmem:[#allocation6] sm:$0xff]  ;;  %v2888_v33 = vld [vmem:[#allocation9 + $0x78] sm:$0xff] }
  0x29   :  { %575 = vmatpush.bf16.xpose.msra.mxu2 %v2847_v6  ;;  %v2850_v27 = vld [vmem:[#allocation6 + $0x48] sm:$0xff]  ;;  %v2849_v31 = vld [vmem:[#allocation6 + $0x40] sm:$0xff]  ;;  %v2896_v34 = vld [vmem:[#allocation11 + $0x38] sm:$0xff] }
  0x2a   :  { %624 = vmatpush.bf16.xpose.msra.mxu3 %v2855_v7  ;;  %v2904_v35 = vld [vmem:[#allocation11 + $0x78] sm:$0xff]  ;;  %v3416_v36 = vld [vmem:[#allocation3] sm:$0xff]  ;;  %v2879_v37 = vld [vmem:[#allocation9 + $0x30] sm:$0xff] }
  0x2b   :  { %v2887_v38 = vld [vmem:[#allocation9 + $0x70] sm:$0xff]  ;;  %v2878_v41 = vld [vmem:[#allocation9 + $0x28] sm:$0xff]  ;;  %v2877_v46 = vld [vmem:[#allocation9 + $0x20] sm:$0xff] }
  0x2c   :  { %v2895_v39 = vld [vmem:[#allocation11 + $0x30] sm:$0xff]  ;;  %v2886_v42 = vld [vmem:[#allocation9 + $0x68] sm:$0xff]  ;;  %v2885_v47 = vld [vmem:[#allocation9 + $0x60] sm:$0xff] }
  0x2d   :  { %v2903_v40 = vld [vmem:[#allocation11 + $0x70] sm:$0xff]  ;;  %v2894_v43 = vld [vmem:[#allocation11 + $0x28] sm:$0xff]  ;;  %v2893_v48 = vld [vmem:[#allocation11 + $0x20] sm:$0xff] }
  0x2e   :  { %v2902_v44 = vld [vmem:[#allocation11 + $0x68] sm:$0xff]  ;;  %v2901_v49 = vld [vmem:[#allocation11 + $0x60] sm:$0xff]  ;;  %v3428_v50 = vld [vmem:[#allocation3 + $0x10] sm:$0xff] }
  0x2f   :  { %382 = vmatpush.bf16.xpose.msra.mxu0 %v2862_v8  ;;  %v3422_v45 = vld [vmem:[#allocation3 + $0x8] sm:$0xff]  ;;  %v2876_v51 = vld [vmem:[#allocation9 + $0x18] sm:$0xff]  ;;  %v2875_v56 = vld [vmem:[#allocation9 + $0x10] sm:$0xff] }
  0x30   :  { %431 = vmatpush.bf16.xpose.msra.mxu1 %v2870_v9  ;;  %v2884_v52 = vld [vmem:[#allocation9 + $0x58] sm:$0xff]  ;;  %v2883_v57 = vld [vmem:[#allocation9 + $0x50] sm:$0xff]  ;;  %v3440_v60 = vld [vmem:[#allocation3 + $0x20] sm:$0xff] }
  0x31   :  { %576 = vmatpush.bf16.xpose.msra.mxu2 %v2846_v10  ;;  %v2892_v53 = vld [vmem:[#allocation11 + $0x18] sm:$0xff]  ;;  %v2891_v58 = vld [vmem:[#allocation11 + $0x10] sm:$0xff]  ;;  %v2874_v61 = vld [vmem:[#allocation9 + $0x8] sm:$0xff] }
  0x32   :  { %625 = vmatpush.bf16.xpose.msra.mxu3 %v2854_v11  ;;  %v2900_v54 = vld [vmem:[#allocation11 + $0x58] sm:$0xff]  ;;  %v2899_v59 = vld [vmem:[#allocation11 + $0x50] sm:$0xff]  ;;  %v2882_v62 = vld [vmem:[#allocation9 + $0x48] sm:$0xff] }
  0x33   :  { %v3434_v55 = vld [vmem:[#allocation3 + $0x18] sm:$0xff]  ;;  %v2890_v63 = vld [vmem:[#allocation11 + $0x8] sm:$0xff]  ;;  %v2873_v2 = vld [vmem:[#allocation9] sm:$0xff] }
  0x34   :  { %v2898_v0 = vld [vmem:[#allocation11 + $0x48] sm:$0xff]  ;;  %v2881_v3 = vld [vmem:[#allocation9 + $0x40] sm:$0xff]  ;;  %v3452_v6 = vld [vmem:[#allocation3 + $0x30] sm:$0xff] }
  0x35   :  { %v3446_v1 = vld [vmem:[#allocation3 + $0x28] sm:$0xff]  ;;  %v2889_v4 = vld [vmem:[#allocation11] sm:$0xff]  ;;  %v3458_v7 = vld [vmem:[#allocation3 + $0x38] sm:$0xff] }
  0x36   :  { %v2897_v5 = vld [vmem:[#allocation11 + $0x40] sm:$0xff] }
  0x37   :  { %383 = vmatpush.bf16.xpose.msra.mxu0 %v2861_v12 }
  0x38   :  { %432 = vmatpush.bf16.xpose.msra.mxu1 %v2869_v13 }
  0x39   :  { %577 = vmatpush.bf16.xpose.msra.mxu2 %v2845_v14 }
  0x3a   :  { %626 = vmatpush.bf16.xpose.msra.mxu3 %v2853_v15 }
  0x3f   :  { %384 = vmatpush.bf16.xpose.msra.mxu0 %v2860_v16 }
  0x40   :  { %433 = vmatpush.bf16.xpose.msra.mxu1 %v2868_v17 }
  0x41   :  { %578 = vmatpush.bf16.xpose.msra.mxu2 %v2844_v18 }
  0x42   :  { %627 = vmatpush.bf16.xpose.msra.mxu3 %v2852_v19 }
  0x47   :  { %385 = vmatpush.bf16.xpose.msra.mxu0 %v2859_v20 }
  0x48   :  { %434 = vmatpush.bf16.xpose.msra.mxu1 %v2867_v21 }
  0x49   :  { %579 = vmatpush.bf16.xpose.msra.mxu2 %v2843_v22  ;;  %v2912_v22 = vld [vmem:[#allocation12 + $0x38] sm:$0xff] }
  0x4a   :  { %628 = vmatpush.bf16.xpose.msra.mxu3 %v2851_v23 }
  0x4f   :  { %386 = vmatpush.bf16.xpose.msra.mxu0 %v2858_v24 }
  0x50   :  { %435 = vmatpush.bf16.xpose.msra.mxu1 %v2866_v25 }
  0x51   :  { %580 = vmatpush.bf16.xpose.msra.mxu2 %v2842_v26 }
  0x52   :  { %629 = vmatpush.bf16.xpose.msra.mxu3 %v2850_v27 }
  0x57   :  { %387 = vmatpush.bf16.xpose.msra.mxu0 %v2857_v28 }
  0x58   :  { %436 = vmatpush.bf16.xpose.msra.mxu1 %v2865_v29  ;;  %v2920_v29 = vld [vmem:[#allocation12 + $0x78] sm:$0xff] }
  0x59   :  { %581 = vmatpush.bf16.xpose.msra.mxu2 %v2841_v30  ;;  %v2928_v30 = vld [vmem:[#allocation14 + $0x38] sm:$0xff] }
  0x5a   :  { %630 = vmatpush.bf16.xpose.msra.mxu3 %v2849_v31  ;;  %v2936_v31 = vld [vmem:[#allocation14 + $0x78] sm:$0xff] }
  0x5e   :  { %388 = vmatmul.bf16.vlgmr.msra.gmra.mxu0 %v3416_v36 }
  0x5f   :  { %832 = vmatpush.bf16.xpose.msrb.mxu0 %v2896_v34  ;;  %437 = vmatmul.bf16.vlgmr.msra.gmra.mxu1 %v3416_v36 }
  0x60   :  { %881 = vmatpush.bf16.xpose.msrb.mxu1 %v2904_v35  ;;  %582 = vmatmul.bf16.vlgmr.msra.gmra.mxu2 %v3416_v36 }
  0x61   :  { %1026 = vmatpush.bf16.xpose.msrb.mxu2 %v2880_v32  ;;  %631 = vmatmul.bf16.vlgmr.msra.gmra.mxu3 %v3416_v36 }
  0x62   :  { %1075 = vmatpush.bf16.xpose.msrb.mxu3 %v2888_v33 }
  0x67   :  { %833 = vmatpush.bf16.xpose.msrb.mxu0 %v2895_v39 }
  0x68   :  { %882 = vmatpush.bf16.xpose.msrb.mxu1 %v2903_v40 }
  0x69   :  { %1027 = vmatpush.bf16.xpose.msrb.mxu2 %v2879_v37 }
  0x6a   :  { %1076 = vmatpush.bf16.xpose.msrb.mxu3 %v2887_v38  ;;  %v2911_v38 = vld [vmem:[#allocation12 + $0x30] sm:$0xff] }
  0x6e   :  { %393 = vmatmul.bf16.gmra.mxu0 %v3422_v45 }
  0x6f   :  { %834 = vmatpush.bf16.xpose.msrb.mxu0 %v2894_v43  ;;  %442 = vmatmul.bf16.gmra.mxu1 %v3422_v45 }
  0x70   :  { %883 = vmatpush.bf16.xpose.msrb.mxu1 %v2902_v44  ;;  %587 = vmatmul.bf16.gmra.mxu2 %v3422_v45  ;;  %v2919_v44 = vld [vmem:[#allocation12 + $0x70] sm:$0xff] }
  0x71   :  { %1028 = vmatpush.bf16.xpose.msrb.mxu2 %v2878_v41  ;;  %636 = vmatmul.bf16.gmra.mxu3 %v3422_v45 }
  0x72   :  { %1077 = vmatpush.bf16.xpose.msrb.mxu3 %v2886_v42 }
  0x77   :  { %835 = vmatpush.bf16.xpose.msrb.mxu0 %v2893_v48 }
  0x78   :  { %884 = vmatpush.bf16.xpose.msrb.mxu1 %v2901_v49 }
  0x79   :  { %1029 = vmatpush.bf16.xpose.msrb.mxu2 %v2877_v46 }
  0x7a   :  { %1078 = vmatpush.bf16.xpose.msrb.mxu3 %v2885_v47  ;;  %v2935_v47 = vld [vmem:[#allocation14 + $0x70] sm:$0xff] }
  0x7e   :  { %398 = vmatmul.bf16.gmra.mxu0 %v3428_v50 }
  0x7f   :  { %447 = vmatmul.bf16.gmra.mxu1 %v3428_v50  ;;  %836 = vmatpush.bf16.xpose.msrb.mxu0 %v2892_v53 }
  0x80   :  { %592 = vmatmul.bf16.gmra.mxu2 %v3428_v50  ;;  %885 = vmatpush.bf16.xpose.msrb.mxu1 %v2900_v54 }
  0x81   :  { %641 = vmatmul.bf16.gmra.mxu3 %v3428_v50  ;;  %1030 = vmatpush.bf16.xpose.msrb.mxu2 %v2876_v51 }
  0x82   :  { %1079 = vmatpush.bf16.xpose.msrb.mxu3 %v2884_v52 }
  0x87   :  { %837 = vmatpush.bf16.xpose.msrb.mxu0 %v2891_v58 }
  0x88   :  { %886 = vmatpush.bf16.xpose.msrb.mxu1 %v2899_v59  ;;  %v2910_v59 = vld [vmem:[#allocation12 + $0x28] sm:$0xff] }
  0x89   :  { %1031 = vmatpush.bf16.xpose.msrb.mxu2 %v2875_v56 }
  0x8a   :  { %1080 = vmatpush.bf16.xpose.msrb.mxu3 %v2883_v57 }
  0x8e   :  { %403 = vmatmul.bf16.gmra.mxu0 %v3434_v55 }
  0x8f   :  { %452 = vmatmul.bf16.gmra.mxu1 %v3434_v55  ;;  %838 = vmatpush.bf16.xpose.msrb.mxu0 %v2890_v63 }
  0x90   :  { %597 = vmatmul.bf16.gmra.mxu2 %v3434_v55  ;;  %887 = vmatpush.bf16.xpose.msrb.mxu1 %v2898_v0 }
  0x91   :  { %646 = vmatmul.bf16.gmra.mxu3 %v3434_v55  ;;  %1032 = vmatpush.bf16.xpose.msrb.mxu2 %v2874_v61 }
  0x92   :  { %1081 = vmatpush.bf16.xpose.msrb.mxu3 %v2882_v62 }
  0x97   :  { %839 = vmatpush.bf16.xpose.msrb.mxu0 %v2889_v4  ;;  %v2918_v4 = vld [vmem:[#allocation12 + $0x68] sm:$0xff] }
  0x98   :  { %888 = vmatpush.bf16.xpose.msrb.mxu1 %v2897_v5  ;;  %v2926_v5 = vld [vmem:[#allocation14 + $0x28] sm:$0xff] }
  0x99   :  { %1033 = vmatpush.bf16.xpose.msrb.mxu2 %v2873_v2 }
  0x9a   :  { %1082 = vmatpush.bf16.xpose.msrb.mxu3 %v2881_v3 }
  0x9e   :  { %408 = vmatmul.bf16.gmra.mxu0 %v3440_v60 }
  0x9f   :  { %457 = vmatmul.bf16.gmra.mxu1 %v3440_v60  ;;  %1988 = vmatpush.bf16.msra.mxu0 %v2928_v30 }
  0xa0   :  { %602 = vmatmul.bf16.gmra.mxu2 %v3440_v60  ;;  %2037 = vmatpush.bf16.msra.mxu1 %v2936_v31 }
  0xa1   :  { %651 = vmatmul.bf16.gmra.mxu3 %v3440_v60  ;;  %2182 = vmatpush.bf16.msra.mxu2 %v2912_v22 }
  0xa2   :  { %2231 = vmatpush.bf16.msra.mxu3 %v2920_v29 }
  0xa4   :  { %2038 = vmatpush.bf16.msra.mxu1 %v2935_v47 }
  0xa5   :  { %2183 = vmatpush.bf16.msra.mxu2 %v2911_v38 }
  0xa6   :  { %2232 = vmatpush.bf16.msra.mxu3 %v2919_v44 }
  0xa9   :  { %2184 = vmatpush.bf16.msra.mxu2 %v2910_v59 }
  0xaa   :  { %2233 = vmatpush.bf16.msra.mxu3 %v2918_v4  ;;  %v2932_v4 = vld [vmem:[#allocation14 + $0x58] sm:$0xff] }
  0xae   :  { %413 = vmatmul.bf16.gmra.mxu0 %v3446_v1 }
  0xaf   :  { %462 = vmatmul.bf16.gmra.mxu1 %v3446_v1 }
  0xb0   :  { %607 = vmatmul.bf16.gmra.mxu2 %v3446_v1 }
  0xb1   :  { %656 = vmatmul.bf16.gmra.mxu3 %v3446_v1 }
  0xbe   :  { %418 = vmatmul.bf16.gmra.mxu0 %v3452_v6 }
  0xbf   :  { %467 = vmatmul.bf16.gmra.mxu1 %v3452_v6 }
  0xc0   :  { %612 = vmatmul.bf16.gmra.mxu2 %v3452_v6 }
  0xc1   :  { %661 = vmatmul.bf16.gmra.mxu3 %v3452_v6 }
  0xce   :  { %423 = vmatmul.bf16.gmra.mxu0 %v3458_v7 }
  0xcf   :  { %472 = vmatmul.bf16.gmra.mxu1 %v3458_v7 }
  0xd0   :  { %617 = vmatmul.bf16.gmra.mxu2 %v3458_v7 }
  0xd1   :  { %666 = vmatmul.bf16.gmra.mxu3 %v3458_v7 }
  0xdb   :  { %v389_v8 = vpop.f32.mrf.mxu0 }
  0xdc   :  { %v438_v9 = vpop.f32.mrf.mxu1 }
  0xde   :  { %840 = vmatmul.bf16.vlgmr.msrb.gmra.mxu0 %v3416_v36 }
  0xdf   :  { %889 = vmatmul.bf16.vlgmr.msrb.gmra.mxu1 %v3416_v36 }
  0xe0   :  { %1034 = vmatmul.bf16.vlgmr.msrb.gmra.mxu2 %v3416_v36 }
  0xe1   :  { %1083 = vmatmul.bf16.vlgmr.msrb.gmra.mxu3 %v3416_v36 }
  0xe3   :  { %v583_v10 = vpop.f32.mrf.mxu2  ;;  %v391_v14 = vpop.f32.mrf.mxu0 }
  0xe4   :  { %v632_v11 = vpop.f32.mrf.mxu3  ;;  %v3468_v12 = vadd.f32 %v583_v10, %v389_v8  ;;  %v440_v15 = vpop.f32.mrf.mxu1  ;;  %v2934_v8 = vld [vmem:[#allocation14 + $0x68] sm:$0xff] }
  0xe5   :  { %v3470_v13 = vadd.f32 %v632_v11, %v438_v9  ;;  %2039 = vmatpush.bf16.msra.mxu1 %v2934_v8 }
  0xe6   :  { %v2673_v29 = vmul.f32 -1.442695, %v3468_v12 }
  0xe7   :  { %v2674_v30 = vmul.f32 -1.442695, %v3470_v13 }
  0xe8   :  { %2994 = vpow2.f32 %v2673_v29 }
  0xe9   :  { %2996 = vpow2.f32 %v2674_v30 }
  0xeb   :  { %v585_v16 = vpop.f32.mrf.mxu2  ;;  %v394_v20 = vpop.f32.mrf.mxu0 }
  0xec   :  { %v634_v17 = vpop.f32.mrf.mxu3  ;;  %v3472_v18 = vadd.f32 %v585_v16, %v391_v14  ;;  %v443_v21 = vpop.f32.mrf.mxu1  ;;  %v2909_v14 = vld [vmem:[#allocation12 + $0x20] sm:$0xff] }
  0xed   :  { %v3474_v19 = vadd.f32 %v634_v17, %v440_v15  ;;  %2185 = vmatpush.bf16.msra.mxu2 %v2909_v14 }
  0xee   :  { %845 = vmatmul.bf16.gmra.mxu0 %v3422_v45 }
  0xef   :  { %894 = vmatmul.bf16.gmra.mxu1 %v3422_v45  ;;  %v2676_v38 = vmul.f32 -1.442695, %v3474_v19 }
  0xf0   :  { %1039 = vmatmul.bf16.gmra.mxu2 %v3422_v45 }
  0xf1   :  { %1088 = vmatmul.bf16.gmra.mxu3 %v3422_v45  ;;  %v2927_v45 = vld [vmem:[#allocation14 + $0x30] sm:$0xff] }
  0xf2   :  { %1989 = vmatpush.bf16.msra.mxu0 %v2927_v45 }
  0xf3   :  { %v588_v23 = vpop.f32.mrf.mxu2  ;;  %v396_v27 = vpop.f32.mrf.mxu0 }
  0xf4   :  { %v637_v24 = vpop.f32.mrf.mxu3  ;;  %v3480_v25 = vadd.f32 %v588_v23, %v394_v20  ;;  %v445_v28 = vpop.f32.mrf.mxu1  ;;  %v2917_v23 = vld [vmem:[#allocation12 + $0x60] sm:$0xff] }
  0xf5   :  { %v3482_v26 = vadd.f32 %v637_v24, %v443_v21  ;;  %v2933_v24 = vld [vmem:[#allocation14 + $0x60] sm:$0xff]  ;;  %2234 = vmatpush.bf16.msra.mxu3 %v2917_v23 }
  0xf6   :  { %1990 = vmatpush.bf16.msra.mxu0 %v2926_v5  ;;  %2040 = vmatpush.bf16.msra.mxu1 %v2933_v24  ;;  %v2907_v24 = vld [vmem:[#allocation12 + $0x10] sm:$0xff] }
  0xfa   :  { %2041 = vmatpush.bf16.msra.mxu1 %v2932_v4 }
  0xfb   :  { %v590_v32 = vpop.f32.mrf.mxu2  ;;  %v399_v34 = vpop.f32.mrf.mxu0 }
  0xfc   :  { %v639_v33 = vpop.f32.mrf.mxu3  ;;  %v448_v35 = vpop.f32.mrf.mxu1  ;;  %v3484_v36 = vadd.f32 %v590_v32, %v396_v27 }
  0xfd   :  { %v3486_v37 = vadd.f32 %v639_v33, %v445_v28  ;;  %v2675_v33 = vmul.f32 -1.442695, %v3472_v18 }
  0xfe   :  { %850 = vmatmul.bf16.gmra.mxu0 %v3428_v50 }
  0xff   :  { %899 = vmatmul.bf16.gmra.mxu1 %v3428_v50  ;;  %2998 = vpow2.f32 %v2675_v33 }
 0x100   :  { %1044 = vmatmul.bf16.gmra.mxu2 %v3428_v50  ;;  %3000 = vpow2.f32 %v2676_v38  ;;  %v2680_v38 = vmul.f32 -1.442695, %v3486_v37 }
 0x101   :  { %1093 = vmatmul.bf16.gmra.mxu3 %v3428_v50 }
 0x103   :  { %v593_v39 = vpop.f32.mrf.mxu2  ;;  %v401_v41 = vpop.f32.mrf.mxu0 }
 0x104   :  { %v642_v40 = vpop.f32.mrf.mxu3  ;;  %v450_v42 = vpop.f32.mrf.mxu1  ;;  %v3492_v43 = vadd.f32 %v593_v39, %v399_v34 }
 0x105   :  { %v3494_v46 = vadd.f32 %v642_v40, %v448_v35  ;;  %v2995_v39 = vpop.eup %2994 }
 0x106   :  { %v2997_v40 = vpop.eup %2996  ;;  %v3545_v47 = vadd.f32 1.0, %v2995_v39 }
 0x108   :  { %vm1257_vm0 = vweird.f32 %v3545_v47 }
 0x10b   :  { %v595_v48 = vpop.f32.mrf.mxu2  ;;  %v404_v50 = vpop.f32.mrf.mxu0 }
 0x10c   :  { %v644_v49 = vpop.f32.mrf.mxu3  ;;  %v3496_v51 = vadd.f32 %v595_v48, %v401_v41  ;;  %v453_v52 = vpop.f32.mrf.mxu1 }
 0x10d   :  { %v3502_v58 = vadd.f32 %v644_v49, %v450_v42  ;;  %v2999_v48 = vpop.eup %2998  ;;  %v3547_v49 = vadd.f32 1.0, %v2997_v40 }
 0x10e   :  { %855 = vmatmul.bf16.gmra.mxu0 %v3434_v55 }
 0x10f   :  { %904 = vmatmul.bf16.gmra.mxu1 %v3434_v55  ;;  %vm1272_vm3 = vweird.f32 %v3547_v49 }
 0x110   :  { %1049 = vmatmul.bf16.gmra.mxu2 %v3434_v55 }
 0x111   :  { %1098 = vmatmul.bf16.gmra.mxu3 %v3434_v55 }
 0x113   :  { %v598_v53 = vpop.f32.mrf.mxu2  ;;  %v406_v56 = vpop.f32.mrf.mxu0 }
 0x114   :  { %v647_v54 = vpop.f32.mrf.mxu3  ;;  %v455_v57 = vpop.f32.mrf.mxu1  ;;  %v3504_v61 = vadd.f32 %v598_v53, %v404_v50  ;;  %v2908_v50 = vld [vmem:[#allocation12 + $0x18] sm:$0xff] }
 0x115   :  { %v3506_v62 = vadd.f32 %v647_v54, %v453_v52  ;;  %v3001_v52 = vpop.eup %3000  ;;  %v3553_v54 = vadd.f32 1.0, %v2999_v48  ;;  %2186 = vmatpush.bf16.msra.mxu2 %v2908_v50  ;;  %v1261_v50 = vand.u32 2147483647, %v3545_v47 }
 0x116   :  { %v3562_v59 = vadd.f32 1.0, %v3001_v52 }
 0x117   :  { %4668 = vst [vmem:[#allocation21_spill] sm:$0xff] %v3506_v62  ;;  %vm3627_vm1 = vcmp.eq.f32.partialorder %v1261_v50, 8.507059e+37  ;;  %v2923_v50 = vld [vmem:[#allocation14 + $0x10] sm:$0xff]  ;;  %vm1287_vm6 = vweird.f32 %v3553_v54 }
 0x118   :  { %vm1302_vm11 = vweird.f32 %v3562_v59 }
 0x119   :  { %2187 = vmatpush.bf16.msra.mxu2 %v2907_v24 }
 0x11b   :  { %v600_v63 = vpop.f32.mrf.mxu2  ;;  %v409_v2 = vpop.f32.mrf.mxu0 }
 0x11c   :  { %v649_v0 = vpop.f32.mrf.mxu3  ;;  %v458_v3 = vpop.f32.mrf.mxu1  ;;  %v3508_v55 = vadd.f32 %v600_v63, %v406_v56 }
 0x11d   :  { %v3514_v9 = vadd.f32 %v649_v0, %v455_v57  ;;  %v2678_v57 = vmul.f32 -1.442695, %v3482_v26 }
 0x11e   :  { %4669 = vst [vmem:[#allocation22_spill] sm:$0xff] %v3508_v55  ;;  %860 = vmatmul.bf16.gmra.mxu0 %v3440_v60 }
 0x11f   :  { %909 = vmatmul.bf16.gmra.mxu1 %v3440_v60  ;;  %4670 = vst [vmem:[#allocation23_spill] sm:$0xff] %v3514_v9 }
 0x120   :  { %1054 = vmatmul.bf16.gmra.mxu2 %v3440_v60 }
 0x121   :  { %1103 = vmatmul.bf16.gmra.mxu3 %v3440_v60  ;;  %v2925_v60 = vld [vmem:[#allocation14 + $0x20] sm:$0xff] }
 0x122   :  { %1991 = vmatpush.bf16.msra.mxu0 %v2925_v60 }
 0x123   :  { %v603_v10 = vpop.f32.mrf.mxu2  ;;  %v3520_v17 = vpop.f32.mrf.mxu0 }
 0x124   :  { %v652_v11 = vpop.f32.mrf.mxu3  ;;  %v3516_v15 = vadd.f32 %v603_v10, %v409_v2  ;;  %v3522_v20 = vpop.f32.mrf.mxu1  ;;  %v2916_v2 = vld [vmem:[#allocation12 + $0x58] sm:$0xff]  ;;  %v2679_v10 = vmul.f32 -1.442695, %v3484_v36 }
 0x125   :  { %v3518_v16 = vadd.f32 %v652_v11, %v458_v3  ;;  %v2924_v3 = vld [vmem:[#allocation14 + $0x18] sm:$0xff]  ;;  %2235 = vmatpush.bf16.msra.mxu3 %v2916_v2 }
 0x126   :  { %1992 = vmatpush.bf16.msra.mxu0 %v2924_v3  ;;  %v2682_v3 = vmul.f32 -1.442695, %v3494_v46 }
 0x12a   :  { %1993 = vmatpush.bf16.msra.mxu0 %v2923_v50 }
 0x12b   :  { %v3524_v21 = vpop.f32.mrf.mxu2  ;;  %v414_v27 = vpop.f32.mrf.mxu0 }
 0x12c   :  { %v3526_v22 = vpop.f32.mrf.mxu3  ;;  %v463_v28 = vpop.f32.mrf.mxu1 }
 0x12e   :  { %865 = vmatmul.bf16.gmra.mxu0 %v3446_v1 }
 0x12f   :  { %914 = vmatmul.bf16.gmra.mxu1 %v3446_v1 }
 0x130   :  { %1059 = vmatmul.bf16.gmra.mxu2 %v3446_v1 }
 0x131   :  { %1108 = vmatmul.bf16.gmra.mxu3 %v3446_v1  ;;  %v2677_v1 = vmul.f32 -1.442695, %v3480_v25 }
 0x133   :  { %v608_v31 = vpop.f32.mrf.mxu2  ;;  %v3535_v34 = vpop.f32.mrf.mxu0  ;;  %3002 = vpow2.f32 %v2677_v1 }
 0x134   :  { %v657_v32 = vpop.f32.mrf.mxu3  ;;  %v3537_v35 = vpop.f32.mrf.mxu1  ;;  %v3549_v53 = vadd.f32 %v608_v31, %v414_v27  ;;  %3004 = vrcp.f32 %v3545_v47 }
 0x135   :  { %4671 = vst [vmem:[#allocation24_spill] sm:$0xff] %v3537_v35  ;;  %v3555_v56 = vadd.f32 %v657_v32, %v463_v28  ;;  %3006 = vrcp.f32 %v3547_v49  ;;  %v1306_v35 = vand.u32 2147483647, %v3562_v59 }
 0x136   :  { %4674 = vst [vmem:[#allocation27_spill] sm:$0xff] %v3549_v53  ;;  %3008 = vrcp.f32 %v3553_v54 }
 0x137   :  { %4675 = vst [vmem:[#allocation28_spill] sm:$0xff] %v3555_v56  ;;  %3010 = vpow2.f32 %v2678_v57  ;;  %vm3699_vm13 = vcmp.eq.f32.partialorder %v1306_v35, 8.507059e+37 }
 0x138   :  { %3012 = vrcp.f32 %v3562_v59 }
 0x139   :  { %3014 = vpow2.f32 %v2679_v10  ;;  %v1276_v10 = vand.u32 2147483647, %v3547_v49 }
 0x13b   :  { %v3540_v41 = vpop.f32.mrf.mxu2  ;;  %v419_v44 = vpop.f32.mrf.mxu0  ;;  %vm3646_vm5 = vcmp.eq.f32.partialorder %v1276_v10, 8.507059e+37 }
 0x13c   :  { %4672 = vst [vmem:[#allocation25_spill] sm:$0xff] %v3540_v41  ;;  %v3542_v42 = vpop.f32.mrf.mxu3  ;;  %v468_v45 = vpop.f32.mrf.mxu1 }
 0x13d   :  { %4673 = vst [vmem:[#allocation26_spill] sm:$0xff] %v3542_v42 }
 0x13e   :  { %870 = vmatmul.bf16.gmra.mxu0 %v3452_v6 }
 0x13f   :  { %919 = vmatmul.bf16.gmra.mxu1 %v3452_v6 }
 0x140   :  { %1064 = vmatmul.bf16.gmra.mxu2 %v3452_v6 }
 0x141   :  { %1113 = vmatmul.bf16.gmra.mxu3 %v3452_v6  ;;  %v3003_v6 = vpop.eup %3002 }
 0x142   :  { %v3574_v23 = vpop.eup %3004  ;;  %v3579_v27 = vadd.f32 1.0, %v3003_v6 }
 0x143   :  { %v613_v63 = vpop.f32.mrf.mxu2  ;;  %v3564_v5 = vpop.f32.mrf.mxu0  ;;  %v1253_v28 = vmul.f32 %v3574_v23, %v3545_v47  ;;  %vm1258_vm2 = vweird.f32 %v3574_v23 }
 0x144   :  { %v662_v0 = vpop.f32.mrf.mxu3  ;;  %4676 = vst [vmem:[#allocation29_spill] sm:$0xff] %v3564_v5  ;;  %v3566_v8 = vpop.f32.mrf.mxu1  ;;  %v3570_v11 = vadd.f32 %v613_v63, %v419_v44  ;;  %3016 = vrcp.f32 %v3579_v27  ;;  %v2681_v44 = vmul.f32 -1.442695, %v3492_v43  ;;  %vm3660_vm7 = vmor %vm1257_vm0, %vm1258_vm2  ;;  %vm1317_vm0 = vweird.f32 %v3579_v27 }
 0x145   :  { %4677 = vst [vmem:[#allocation30_spill] sm:$0xff] %v3566_v8  ;;  %v3572_v14 = vadd.f32 %v662_v0, %v468_v45  ;;  %v3577_v60 = vpop.eup %3006  ;;  %v1254_v45 = vsub.f32 1.0, %v1253_v28  ;;  %v1263_v0 = vand.u32 2147483648, %v3545_v47  ;;  %3018 = vpow2.f32 %v2680_v38  ;;  %v2915_v8 = vld [vmem:[#allocation12 + $0x50] sm:$0xff] }
 0x146   :  { %4678 = vst [vmem:[#allocation31_spill] sm:$0xff] %v3570_v11  ;;  %v3583_v29 = vpop.eup %3008  ;;  %v1268_v30 = vmul.f32 %v3577_v60, %v3547_v49  ;;  %3020 = vpow2.f32 %v2681_v44  ;;  %v2931_v11 = vld [vmem:[#allocation14 + $0x50] sm:$0xff]  ;;  %vm1273_vm4 = vweird.f32 %v3577_v60  ;;  %2236 = vmatpush.bf16.msra.mxu3 %v2915_v8 }
 0x147   :  { %4679 = vst [vmem:[#allocation32_spill] sm:$0xff] %v3572_v14  ;;  %v3011_v33 = vpop.eup %3010  ;;  %v1283_v57 = vmul.f32 %v3583_v29, %v3553_v54  ;;  %v1255_v4 = vmul.f32 %v3574_v23, %v1254_v45  ;;  %2042 = vmatpush.bf16.msra.mxu1 %v2931_v11  ;;  %vm3678_vm9 = vmor %vm1272_vm3, %vm1273_vm4  ;;  %vm1288_vm10 = vweird.f32 %v3583_v29 }
 0x148   :  { %v3596_v1 = vpop.eup %3012  ;;  %v1269_v52 = vsub.f32 1.0, %v1268_v30  ;;  %v3603_v63 = vadd.f32 1.0, %v3011_v33  ;;  %v1278_v30 = vand.u32 2147483648, %v3547_v49  ;;  %vm3720_vm14 = vmor %vm1287_vm6, %vm1288_vm10 }
 0x149   :  { %v3015_v48 = vpop.eup %3014  ;;  %v1298_v2 = vmul.f32 %v3596_v1, %v3562_v59  ;;  %v1284_v33 = vsub.f32 1.0, %v1283_v57  ;;  %v1293_v57 = vand.u32 2147483648, %v3553_v54  ;;  %vm1303_vm12 = vweird.f32 %v3596_v1 }
 0x14a   :  { %v3614_v6 = vadd.f32 1.0, %v3015_v48  ;;  %v3618_v24 = vpop.eup %3016  ;;  %v1270_v28 = vmul.f32 %v3577_v60, %v1269_v52  ;;  %3022 = vrcp.f32 %v3603_v63  ;;  %v1264_v48 = vor.u32 1.1754944e-38, %v1263_v0  ;;  %vm3731_vm15 = vmor %vm1302_vm11, %vm1303_vm12 }
 0x14b   :  { %v3587_v31 = vpop.f32.mrf.mxu2  ;;  %v3592_v39 = vpop.f32.mrf.mxu0  ;;  %v1299_v14 = vsub.f32 1.0, %v1298_v2  ;;  %3024 = vpow2.f32 %v2682_v3  ;;  %v1291_v52 = vand.u32 2147483647, %v3553_v54  ;;  %v1256_v0 = vadd.f32 %v3574_v23, %v1255_v4 }
 0x14c   :  { %4680 = vst [vmem:[#allocation33_spill] sm:$0xff] %v3587_v31  ;;  %v3589_v32 = vpop.f32.mrf.mxu3  ;;  %v3594_v40 = vpop.f32.mrf.mxu1  ;;  %v1313_v2 = vmul.f32 %v3618_v24, %v3579_v27  ;;  %3026 = vrcp.f32 %v3614_v6  ;;  %v2683_v3 = vmul.f32 -1.442695, %v3496_v51  ;;  %v1285_v56 = vmul.f32 %v3583_v29, %v1284_v33 }
 0x14d   :  { %4681 = vst [vmem:[#allocation34_spill] sm:$0xff] %v3589_v32  ;;  %v3019_v31 = vpop.eup %3018  ;;  %v1279_v4 = vor.u32 1.1754944e-38, %v1278_v30  ;;  %v1300_v42 = vmul.f32 %v3596_v1, %v1299_v14  ;;  %vm3664_vm8 = vcmp.eq.f32.partialorder %v1291_v52, 8.507059e+37  ;;  %v1308_v14 = vand.u32 2147483648, %v3562_v59 }
 0x14e   :  { %875 = vmatmul.bf16.gmra.mxu0 %v3458_v7  ;;  %v3669_v30 = vadd.f32 1.0, %v3019_v31  ;;  %v1260_v33 = vsel %vm3660_vm7, %v3574_v23, %v1256_v0  ;;  %v1314_v52 = vsub.f32 1.0, %v1313_v2  ;;  %3028 = vpow2.f32 %v2683_v3 }
 0x14f   :  { %924 = vmatmul.bf16.gmra.mxu1 %v3458_v7  ;;  %v2684_v23 = vmul.f32 -1.442695, %v3502_v58  ;;  %v1265_v2 = vsel %vm3627_vm1, %v1264_v48, %v1260_v33  ;;  %v1309_v45 = vor.u32 1.1754944e-38, %v1308_v14  ;;  %v1321_v59 = vand.u32 2147483647, %v3579_v27 }
 0x150   :  { %1069 = vmatmul.bf16.gmra.mxu2 %v3458_v7  ;;  %3030 = vrcp.f32 %v3669_v30  ;;  %v1315_v48 = vmul.f32 %v3618_v24, %v1314_v52  ;;  %v3739_v14 = vmul.f32 %v1265_v2, %v3468_v12  ;;  %v1323_v33 = vand.u32 2147483648, %v3579_v27  ;;  %v2906_v52 = vld [vmem:[#allocation12 + $0x8] sm:$0xff] }
 0x151   :  { %1118 = vmatmul.bf16.gmra.mxu3 %v3458_v7  ;;  %v2922_v12 = vld [vmem:[#allocation14 + $0x8] sm:$0xff]  ;;  %vm1318_vm1 = vweird.f32 %v3618_v24  ;;  %2188 = vmatpush.bf16.msra.mxu2 %v2906_v52  ;;  %vm3772_vm2 = vcmp.eq.f32.partialorder %v1321_v59, 8.507059e+37  ;;  %vm1332_vm3 = vweird.f32 %v3603_v63  ;;  %vm1347_vm7 = vweird.f32 %v3614_v6 }
 0x152   :  { %v2930_v2 = vld [vmem:[#allocation14 + $0x48] sm:$0xff]  ;;  %1994 = vmatpush.bf16.msra.mxu0 %v2922_v12  ;;  %vm3789_vm4 = vmor %vm1317_vm0, %vm1318_vm1  ;;  %vm1362_vm11 = vweird.f32 %v3669_v30 }
 0x153   :  { %v3623_v38 = vpop.f32.mrf.mxu2  ;;  %v3631_v7 = vpop.f32.mrf.mxu0  ;;  %2043 = vmatpush.bf16.msra.mxu1 %v2930_v2  ;;  %v1351_v2 = vand.u32 2147483647, %v3614_v6 }
 0x154   :  { %v3625_v44 = vpop.f32.mrf.mxu3  ;;  %4684 = vst [vmem:[#allocation35_spill] sm:$0xff] %v3631_v7  ;;  %v3633_v32 = vpop.f32.mrf.mxu1  ;;  %v1271_v7 = vadd.f32 %v3577_v60, %v1270_v28  ;;  %v1294_v28 = vor.u32 1.1754944e-38, %v1293_v57  ;;  %v1286_v57 = vadd.f32 %v3583_v29, %v1285_v56 }
 0x155   :  { %4685 = vst [vmem:[#allocation36_spill] sm:$0xff] %v3633_v32  ;;  %v3021_v32 = vpop.eup %3020 }
 0x156   :  { %v3654_v53 = vpop.eup %3022  ;;  %v3682_v50 = vadd.f32 1.0, %v3021_v32  ;;  %v1275_v31 = vsel %vm3678_vm9, %v3577_v60, %v1271_v7  ;;  %v1301_v32 = vadd.f32 %v3596_v1, %v1300_v42  ;;  %v1353_v60 = vand.u32 2147483648, %v3614_v6 }
 0x157   :  { %v3025_v11 = vpop.eup %3024  ;;  %v1328_v3 = vmul.f32 %v3654_v53, %v3603_v63  ;;  %v1280_v35 = vsel %vm3646_vm5, %v1279_v4, %v1275_v31  ;;  %v2914_v31 = vld [vmem:[#allocation12 + $0x48] sm:$0xff]  ;;  %vm1333_vm6 = vweird.f32 %v3654_v53 }
 0x158   :  { %v3694_v10 = vpop.eup %3026  ;;  %v3712_v42 = vadd.f32 1.0, %v3025_v11  ;;  %3032 = vrcp.f32 %v3682_v50  ;;  %v1290_v11 = vsel %vm3720_vm14, %v3583_v29, %v1286_v57  ;;  %v1305_v29 = vsel %vm3731_vm15, %v3596_v1, %v1301_v32  ;;  %2237 = vmatpush.bf16.msra.mxu3 %v2914_v31  ;;  %vm3846_vm10 = vmor %vm1332_vm3, %vm1333_vm6 }
 0x159   :  { %v1343_v54 = vmul.f32 %v3694_v10, %v3614_v6  ;;  %3034 = vpow2.f32 %v2684_v23  ;;  %v3029_v4 = vpop.eup %3028  ;;  %v3747_v57 = vmul.f32 %v1280_v35, %v3470_v13  ;;  %v1329_v47 = vsub.f32 1.0, %v1328_v3 }
 0x15a   :  { %v1338_v23 = vand.u32 2147483648, %v3603_v63  ;;  %3036 = vrcp.f32 %v3712_v42  ;;  %v1295_v5 = vsel %vm3664_vm8, %v1294_v28, %v1290_v11  ;;  %v1316_v1 = vadd.f32 %v3618_v24, %v1315_v48  ;;  %v3759_v13 = vpop.eup %3030 }
 0x15b   :  { %v3690_v0 = vpop.f32.mrf.mxu2  ;;  %v3703_v56 = vpop.f32.mrf.mxu0  ;;  %v3757_v32 = vadd.f32 %v3623_v38, %v3592_v39  ;;  %v1310_v3 = vsel %vm3699_vm13, %v1309_v45, %v1305_v29  ;;  %v1336_v35 = vand.u32 2147483647, %v3603_v63  ;;  %v3764_v8 = vadd.f32 1.0, %v3029_v4  ;;  %v2905_v45 = vld [vmem:[#allocation12] sm:$0xff] }
 0x15c   :  { %4694 = vst [vmem:[#allocation37_spill] sm:$0xff] %v3690_v0  ;;  %v3692_v49 = vpop.f32.mrf.mxu3  ;;  %v3705_v7 = vpop.f32.mrf.mxu1  ;;  %v1324_v38 = vor.u32 1.1754944e-38, %v1323_v33  ;;  %v3783_v31 = vmul.f32 %v1295_v5, %v3472_v18  ;;  %v1330_v33 = vmul.f32 %v3654_v53, %v1329_v47  ;;  %v1339_v12 = vor.u32 1.1754944e-38, %v1338_v23  ;;  %v2929_v0 = vld [vmem:[#allocation14 + $0x40] sm:$0xff]  ;;  %2189 = vmatpush.bf16.msra.mxu2 %v2905_v45 }
 0x15d   :  { %4695 = vst [vmem:[#allocation38_spill] sm:$0xff] %v3692_v49  ;;  %v1344_v49 = vsub.f32 1.0, %v1343_v54  ;;  %v2913_v54 = vld [vmem:[#allocation12 + $0x40] sm:$0xff]  ;;  %v3796_v41 = vmul.f32 %v1310_v3, %v3474_v19  ;;  %v1320_v18 = vsel %vm3789_vm4, %v3618_v24, %v1316_v1  ;;  %v1358_v27 = vmul.f32 %v3759_v13, %v3669_v30  ;;  %2044 = vmatpush.bf16.msra.mxu1 %v2929_v0 }
 0x15e   :  { %4702 = vst [vmem:[#allocation39_spill] sm:$0xff] %v3757_v32  ;;  %v3770_v11 = vpop.eup %3032  ;;  %v2921_v32 = vld [vmem:[#allocation14] sm:$0xff]  ;;  %v2685_v5 = vmul.f32 -1.442695, %v3504_v61  ;;  %2238 = vmatpush.bf16.msra.mxu3 %v2913_v54  ;;  %vm3806_vm5 = vcmp.eq.f32.partialorder %v1336_v35, 8.507059e+37  ;;  %3038 = vrcp.f32 %v3764_v8  ;;  %v3816_v24 = vadd.f32 %v3625_v44, %v3594_v40 }
 0x15f   :  { %v3035_v52 = vpop.eup %3034  ;;  %v1345_v19 = vmul.f32 %v3694_v10, %v1344_v49  ;;  %v1373_v3 = vmul.f32 %v3770_v11, %v3682_v50  ;;  %1995 = vmatpush.bf16.msra.mxu0 %v2921_v32  ;;  %v1354_v1 = vor.u32 1.1754944e-38, %v1353_v60  ;;  %v1325_v49 = vsel %vm3772_vm2, %v1324_v38, %v1320_v18 }
 0x160   :  { %v3804_v47 = vpop.eup %3036  ;;  %4709 = vst [vmem:[#allocation40_spill] sm:$0xff] %v3816_v24  ;;  %v3820_v35 = vadd.f32 1.0, %v3035_v52  ;;  %v1331_v45 = vadd.f32 %v3654_v53, %v1330_v33  ;;  %vm3825_vm8 = vcmp.eq.f32.partialorder %v1351_v2, 8.507059e+37  ;;  %v1368_v40 = vand.u32 2147483648, %v3669_v30 }
 0x161   :  { %v2686_v44 = vmul.f32 -1.442695, %v3506_v62  ;;  %v1359_v0 = vsub.f32 1.0, %v1358_v27  ;;  %v1388_v32 = vmul.f32 %v3804_v47, %v3712_v42  ;;  %3040 = vpow2.f32 %v2685_v5 }
 0x162   :  { %v2687_v60 = vmul.f32 -1.442695, %v3508_v55  ;;  %v1346_v39 = vadd.f32 %v3694_v10, %v1345_v19  ;;  %vm1348_vm9 = vweird.f32 %v3694_v10  ;;  %v1374_v38 = vsub.f32 1.0, %v1373_v3 }
 0x163   :  { %v3766_v28 = vpop.f32.mrf.mxu2  ;;  %v3778_v4 = vpop.f32.mrf.mxu0  ;;  %v2688_v52 = vmul.f32 -1.442695, %v3514_v9  ;;  %v3840_v2 = vmul.f32 %v1325_v49, %v3480_v25  ;;  %v1366_v27 = vand.u32 2147483647, %v3669_v30  ;;  %3042 = vrcp.f32 %v3820_v35  ;;  %vm3868_vm12 = vmor %vm1347_vm7, %vm1348_vm9 }
 0x164   :  { %v3768_v48 = vpop.f32.mrf.mxu3  ;;  %v3780_v29 = vpop.f32.mrf.mxu1  ;;  %v1335_v63 = vsel %vm3846_vm10, %v3654_v53, %v1331_v45  ;;  %v1381_v3 = vand.u32 2147483647, %v3682_v50  ;;  %v1383_v49 = vand.u32 2147483648, %v3682_v50  ;;  %3044 = vpow2.f32 %v2686_v44 }
 0x165   :  { %v3857_v25 = vpop.eup %3038  ;;  %v1360_v9 = vmul.f32 %v3759_v13, %v1359_v0  ;;  %vm1377_vm13 = vweird.f32 %v3682_v50  ;;  %v1389_v55 = vsub.f32 1.0, %v1388_v32  ;;  %3046 = vpow2.f32 %v2687_v60 }
 0x166   :  { %v1350_v53 = vsel %vm3868_vm12, %v3694_v10, %v1346_v39  ;;  %v1369_v45 = vor.u32 1.1754944e-38, %v1368_v40  ;;  %v1375_v44 = vmul.f32 %v3770_v11, %v1374_v38  ;;  %3048 = vpow2.f32 %v2688_v52 }
 0x167   :  { %v3041_v18 = vpop.eup %3040  ;;  %v1340_v6 = vsel %vm3806_vm5, %v1339_v12, %v1335_v63  ;;  %vm3880_vm14 = vcmp.eq.f32.partialorder %v1366_v27, 8.507059e+37  ;;  %v1398_v0 = vand.u32 2147483648, %v3712_v42  ;;  %v1403_v32 = vmul.f32 %v3857_v25, %v3764_v8 }
 0x168   :  { %vm1363_vm15 = vweird.f32 %v3759_v13  ;;  %vm3889_vm0 = vcmp.eq.f32.partialorder %v1381_v3, 8.507059e+37  ;;  %v1384_v40 = vor.u32 1.1754944e-38, %v1383_v49  ;;  %v1396_v12 = vand.u32 2147483647, %v3712_v42 }
 0x169   :  { %v3894_v23 = vpop.eup %3042  ;;  %v1355_v60 = vsel %vm3825_vm8, %v1354_v1, %v1350_v53  ;;  %v1361_v39 = vadd.f32 %v3759_v13, %v1360_v9  ;;  %v1390_v38 = vmul.f32 %v3804_v47, %v1389_v55  ;;  %v1376_v27 = vadd.f32 %v3770_v11, %v1375_v44  ;;  %vm3926_vm3 = vmor %vm1362_vm11, %vm1363_vm15 }
 0x16a   :  { %v3045_v52 = vpop.eup %3044  ;;  %vm1378_vm1 = vweird.f32 %v3770_v11  ;;  %v3907_v63 = vadd.f32 1.0, %v3041_v18  ;;  %vm1392_vm2 = vweird.f32 %v3712_v42  ;;  %v1399_v55 = vor.u32 1.1754944e-38, %v1398_v0 }
 0x16b   :  { %v1037_v59 = vpop.f32.mrf.mxu2  ;;  %v3853_v5 = vpop.f32.mrf.mxu0  ;;  %v1404_v54 = vsub.f32 1.0, %v1403_v32  ;;  %v3920_v53 = vmul.f32 %v1355_v60, %v3484_v36  ;;  %vm1393_vm4 = vweird.f32 %v3804_v47  ;;  %vm3931_vm5 = vcmp.eq.f32.partialorder %v1396_v12, 8.507059e+37  ;;  %vm3945_vm6 = vmor %vm1377_vm13, %vm1378_vm1 }
 0x16c   :  { %v3837_v33 = vpop.f32.mrf.mxu3  ;;  %v3855_v19 = vpop.f32.mrf.mxu1  ;;  %v1038_v24 = vadd.f32 %v1037_v59, %v3778_v4  ;;  %v1036_v4 = vadd.f32 %v3766_v28, %v3703_v56  ;;  %v3903_v59 = vmul.f32 %v1340_v6, %v3482_v26  ;;  %v1418_v18 = vmul.f32 %v3894_v23, %v3820_v35  ;;  %vm3970_vm8 = vmor %vm1392_vm2, %vm1393_vm4 }
 0x16d   :  { %v3047_v9 = vpop.eup %3046  ;;  %v2689_v36 = vmul.f32 -1.442695, %v3516_v15  ;;  %v1365_v6 = vsel %vm3926_vm3, %v3759_v13, %v1361_v39  ;;  %v1391_v0 = vadd.f32 %v3804_v47, %v1390_v38  ;;  %v3950_v32 = vadd.f32 1.0, %v3045_v52 }
 0x16e   :  { %v1766_v56 = vmul.f32 %v3783_v31, %v1038_v24  ;;  %v3049_v49 = vpop.eup %3048  ;;  %v1764_v24 = vmul.f32 %v3739_v14, %v1036_v4  ;;  %v1380_v12 = vsel %vm3945_vm6, %v3770_v11, %v1376_v27  ;;  %vm1407_vm7 = vweird.f32 %v3764_v8 }
 0x16f   :  { %3050 = vrcp.f32 %v3907_v63  ;;  %v3958_v13 = vadd.f32 1.0, %v3047_v9  ;;  %v1405_v50 = vmul.f32 %v3857_v25, %v1404_v54  ;;  %v1411_v60 = vand.u32 2147483647, %v3764_v8 }
 0x170   :  { %v3962_v39 = vadd.f32 1.0, %v3049_v49  ;;  %v1796_v38 = vpack.c.bf16 %v1766_v56, %v1764_v24  ;;  %v1370_v14 = vsel %vm3880_vm14, %v1369_v45, %v1365_v6  ;;  %v1413_v4 = vand.u32 2147483648, %v3764_v8  ;;  %v4736_v8 = vld [vmem:[#allocation25_spill] sm:$0xff] }
 0x171   :  { %v1419_v52 = vsub.f32 1.0, %v1418_v18  ;;  %3052 = vpow2.f32 %v2689_v36  ;;  %v1385_v27 = vsel %vm3889_vm0, %v1384_v40, %v1380_v12  ;;  %v1395_v62 = vsel %vm3970_vm8, %v3804_v47, %v1391_v0 }
 0x172   :  { %3054 = vrcp.f32 %v3950_v32  ;;  %v2690_v45 = vmul.f32 -1.442695, %v3518_v16  ;;  %1996 = vmatmul.bf16.vlgmr.msra.gmra.mxu0 %v1796_v38  ;;  %2190 = vmatmul.bf16.vlgmr.msra.gmra.mxu2 %v1796_v38  ;;  %v3985_v42 = vadd.f32 %v3524_v21, %v3520_v17  ;;  %v1085_v10 = vadd.f32 %v3768_v48, %v3705_v7 }
 0x173   :  { %v3909_v3 = vpop.f32.mrf.mxu2  ;;  %v3915_v28 = vpop.f32.mrf.mxu0  ;;  %3056 = vrcp.f32 %v3958_v13  ;;  %v1087_v40 = vadd.f32 %v3837_v33, %v3780_v29  ;;  %v1406_v54 = vadd.f32 %v3857_v25, %v1405_v50  ;;  %vm1408_vm9 = vweird.f32 %v3857_v25 }
 0x174   :  { %v3911_v1 = vpop.f32.mrf.mxu3  ;;  %v3917_v26 = vpop.f32.mrf.mxu1  ;;  %v1426_v56 = vand.u32 2147483647, %v3820_v35  ;;  %3058 = vrcp.f32 %v3962_v39  ;;  %v1739_v7 = vmul.f32 %v1370_v14, %v3486_v37  ;;  %vm4002_vm10 = vcmp.eq.f32.partialorder %v1411_v60, 8.507059e+37  ;;  %vm4017_vm11 = vmor %vm1407_vm7, %vm1408_vm9 }
 0x175   :  { %v3999_v21 = vpop.eup %3050  ;;  %v1420_v29 = vmul.f32 %v3894_v23, %v1419_v52  ;;  %v1428_v33 = vand.u32 2147483648, %v3820_v35  ;;  %v4009_v44 = vmul.f32 %v1385_v27, %v3492_v43  ;;  %v1400_v18 = vsel %vm3931_vm5, %v1399_v55, %v1395_v62 }
 0x176   :  { %v1414_v36 = vor.u32 1.1754944e-38, %v1413_v4  ;;  %3060 = vpow2.f32 %v2690_v45  ;;  %v1443_v30 = vand.u32 2147483648, %v3907_v63  ;;  %v2691_v0 = vmul.f32 -1.442695, %v3985_v42 }
 0x177   :  { %v3053_v6 = vpop.eup %3052  ;;  %v1765_v43 = vmul.f32 %v3747_v57, %v1085_v10  ;;  %v1767_v31 = vmul.f32 %v3796_v41, %v1087_v40  ;;  %v1410_v24 = vsel %vm4017_vm11, %v3857_v25, %v1406_v54  ;;  %vm1422_vm12 = vweird.f32 %v3820_v35 }
 0x178   :  { %v4025_v55 = vpop.eup %3054  ;;  %vm4031_vm13 = vcmp.eq.f32.partialorder %v1426_v56, 8.507059e+37  ;;  %v1433_v12 = vmul.f32 %v3999_v21, %v3907_v63  ;;  %v1421_v57 = vadd.f32 %v3894_v23, %v1420_v29  ;;  %vm1423_vm14 = vweird.f32 %v3894_v23 }
 0x179   :  { %v4037_v50 = vpop.eup %3056  ;;  %v1429_v41 = vor.u32 1.1754944e-38, %v1428_v33  ;;  %v1797_v60 = vpack.c.bf16 %v1767_v31, %v1765_v43  ;;  %v4044_v25 = vmul.f32 %v1400_v18, %v3494_v46  ;;  %v1441_v14 = vand.u32 2147483647, %v3907_v63  ;;  %vm4061_vm15 = vmor %vm1422_vm12, %vm1423_vm14 }
 0x17a   :  { %v4041_v38 = vpop.eup %3058  ;;  %v1041_v11 = vadd.f32 %v3909_v3, %v3853_v5  ;;  %v1090_v4 = vadd.f32 %v3911_v1, %v3855_v19  ;;  %v1415_v52 = vsel %vm4002_vm10, %v1414_v36, %v1410_v24  ;;  %v4053_v27 = vor.u32 1.1754944e-38, %v1443_v30 }
 0x17b   :  { %v1042_v9 = vpop.f32.mrf.mxu2  ;;  %v3995_v49 = vpop.f32.mrf.mxu0  ;;  %v1448_v62 = vmul.f32 %v4025_v55, %v3950_v32  ;;  %3062 = vpow2.f32 %v2691_v0  ;;  %2045 = vmatmul.bf16.vlgmr.msra.gmra.mxu1 %v1797_v60  ;;  %2239 = vmatmul.bf16.vlgmr.msra.gmra.mxu3 %v1797_v60  ;;  %v1434_v19 = vsub.f32 1.0, %v1433_v12  ;;  %v4067_v3 = vadd.f32 %v3526_v22, %v3522_v20 }
 0x17c   :  { %v1091_v47 = vpop.f32.mrf.mxu3  ;;  %v3997_v17 = vpop.f32.mrf.mxu1  ;;  %v1043_v1 = vadd.f32 %v1042_v9, %v3915_v28  ;;  %v1425_v48 = vsel %vm4061_vm15, %v3894_v23, %v1421_v57  ;;  %v1463_v35 = vmul.f32 %v4037_v50, %v3958_v13  ;;  %v1478_v29 = vmul.f32 %v4041_v38, %v3962_v39 }
 0x17d   :  { %v3061_v10 = vpop.eup %3060  ;;  %v1092_v40 = vadd.f32 %v1091_v47, %v3917_v26  ;;  %v4078_v33 = vadd.f32 1.0, %v3053_v6  ;;  %v1768_v20 = vmul.f32 %v3840_v2, %v1041_v11  ;;  %v1769_v22 = vmul.f32 %v3903_v59, %v1090_v4 }
 0x17e   :  { %v1770_v28 = vmul.f32 %v3920_v53, %v1043_v1  ;;  %v1449_v9 = vsub.f32 1.0, %v1448_v62  ;;  %v1456_v47 = vand.u32 2147483647, %v3950_v32  ;;  %v1458_v23 = vand.u32 2147483648, %v3950_v32 }
 0x17f   :  { %v1771_v26 = vmul.f32 %v1739_v7, %v1092_v40  ;;  %v4085_v18 = vadd.f32 1.0, %v3061_v10  ;;  %v1430_v36 = vsel %vm4031_vm13, %v1429_v41, %v1425_v48  ;;  %vm1437_vm0 = vweird.f32 %v3907_v63  ;;  %v4754_v40 = vld [vmem:[#allocation22_spill] sm:$0xff]  ;;  %v4757_v63 = vld [vmem:[#allocation33_spill] sm:$0xff] }
 0x180   :  { %v2692_v6 = vmul.f32 -1.442695, %v4067_v3  ;;  %v1798_v2 = vpack.c.bf16 %v1770_v28, %v1768_v20  ;;  %v1742_v53 = vmul.f32 %v1415_v52, %v3496_v51  ;;  %v1435_v7 = vmul.f32 %v3999_v21, %v1434_v19 }
 0x181   :  { %v1799_v37 = vpack.c.bf16 %v1771_v26, %v1769_v22  ;;  %v3063_v59 = vpop.eup %3062  ;;  %v1464_v30 = vsub.f32 1.0, %v1463_v35  ;;  %v1479_v0 = vsub.f32 1.0, %v1478_v29  ;;  %vm1438_vm1 = vweird.f32 %v3999_v21 }
 0x182   :  { %vm1452_vm2 = vweird.f32 %v3950_v32  ;;  %3064 = vrcp.f32 %v4078_v33  ;;  %2001 = vmatmul.bf16.gmra.mxu0 %v1798_v2  ;;  %2195 = vmatmul.bf16.gmra.mxu2 %v1798_v2  ;;  %v1743_v24 = vmul.f32 %v1430_v36, %v3502_v58  ;;  %v1450_v51 = vmul.f32 %v4025_v55, %v1449_v9  ;;  %vm4140_vm7 = vmor %vm1437_vm0, %vm1438_vm1  ;;  %v4747_v2 = vld [vmem:[#allocation26_spill] sm:$0xff] }
 0x183   :  { %v1045_v46 = vpop.f32.mrf.mxu2  ;;  %v853_v54 = vpop.f32.mrf.mxu0  ;;  %3066 = vrcp.f32 %v4085_v18  ;;  %v4103_v12 = vadd.f32 %v4736_v8, %v3535_v34  ;;  %vm4105_vm3 = vcmp.eq.f32.partialorder %v1441_v14, 8.507059e+37  ;;  %v4109_v11 = vadd.f32 1.0, %v3063_v59 }
 0x184   :  { %v1094_v45 = vpop.f32.mrf.mxu3  ;;  %v902_v56 = vpop.f32.mrf.mxu1  ;;  %v1046_v43 = vadd.f32 %v1045_v46, %v3995_v49  ;;  %3068 = vpow2.f32 %v2692_v6  ;;  %v1436_v52 = vadd.f32 %v3999_v21, %v1435_v7  ;;  %v1465_v34 = vmul.f32 %v4037_v50, %v1464_v30  ;;  %v4739_v46 = vld [vmem:[#allocation27_spill] sm:$0xff] }
 0x185   :  { %v1095_v31 = vadd.f32 %v1094_v45, %v3997_v17  ;;  %v1480_v62 = vmul.f32 %v4041_v38, %v1479_v0  ;;  %v2693_v14 = vmul.f32 -1.442695, %v4739_v46  ;;  %v1451_v1 = vadd.f32 %v4025_v55, %v1450_v51 }
 0x186   :  { %v1772_v45 = vmul.f32 %v4009_v44, %v1046_v43  ;;  %vm1453_vm4 = vweird.f32 %v4025_v55  ;;  %vm4123_vm5 = vcmp.eq.f32.partialorder %v1456_v47, 8.507059e+37  ;;  %vm1467_vm6 = vweird.f32 %v3958_v13 }
 0x187   :  { %v1773_v10 = vmul.f32 %v4044_v25, %v1095_v31  ;;  %3070 = vrcp.f32 %v4109_v11  ;;  %v2695_v44 = vmul.f32 -1.442695, %v4103_v12  ;;  %v1466_v29 = vadd.f32 %v4037_v50, %v1465_v34  ;;  %vm4157_vm10 = vmor %vm1452_vm2, %vm1453_vm4 }
 0x188   :  { %vm1468_vm8 = vweird.f32 %v4037_v50  ;;  %v1471_v20 = vand.u32 2147483647, %v3958_v13  ;;  %v1473_v22 = vand.u32 2147483648, %v3958_v13  ;;  %v1440_v26 = vsel %vm4140_vm7, %v3999_v21, %v1436_v52  ;;  %v4746_v21 = vld [vmem:[#allocation24_spill] sm:$0xff] }
 0x189   :  { %v1481_v9 = vadd.f32 %v4041_v38, %v1480_v62  ;;  %vm1483_vm9 = vweird.f32 %v4041_v38  ;;  %3072 = vpow2.f32 %v2693_v14  ;;  %v1459_v47 = vor.u32 1.1754944e-38, %v1458_v23  ;;  %vm4175_vm11 = vmor %vm1467_vm6, %vm1468_vm8 }
 0x18a   :  { %v1488_v36 = vand.u32 2147483648, %v3962_v39  ;;  %v4166_v59 = vadd.f32 %v4747_v2, %v4746_v21  ;;  %v1455_v32 = vsel %vm4157_vm10, %v4025_v55, %v1451_v1  ;;  %vm1482_vm12 = vweird.f32 %v3962_v39 }
 0x18b   :  { %v1047_v57 = vpop.f32.mrf.mxu2  ;;  %v4111_v58 = vpop.f32.mrf.mxu0  ;;  %2050 = vmatmul.bf16.gmra.mxu1 %v1799_v37  ;;  %2244 = vmatmul.bf16.gmra.mxu3 %v1799_v37  ;;  %v1486_v30 = vand.u32 2147483647, %v3962_v39  ;;  %3074 = vpow2.f32 %v2695_v44  ;;  %v1445_v0 = vsel %vm4105_vm3, %v4053_v27, %v1440_v26  ;;  %v1470_v55 = vsel %vm4175_vm11, %v4037_v50, %v1466_v29  ;;  %vm4189_vm13 = vmor %vm1482_vm12, %vm1483_vm9  ;;  %v4752_v50 = vld [vmem:[#allocation28_spill] sm:$0xff] }
 0x18c   :  { %v1096_v41 = vpop.f32.mrf.mxu3  ;;  %v1048_v49 = vadd.f32 %v1047_v57, %v853_v54  ;;  %v4113_v4 = vpop.f32.mrf.mxu1  ;;  %vm1472_vm14 = vcmp.eq.f32.partialorder %v1471_v20, 8.507059e+37  ;;  %v1485_v27 = vsel %vm4189_vm13, %v4041_v38, %v1481_v9  ;;  %v2694_v51 = vmul.f32 -1.442695, %v4752_v50  ;;  %v4756_v9 = vld [vmem:[#allocation29_spill] sm:$0xff] }
 0x18d   :  { %v1097_v17 = vadd.f32 %v1096_v41, %v902_v56  ;;  %v4128_v54 = vpop.eup %3064  ;;  %v1460_v57 = vsel %vm4123_vm5, %v1459_v47, %v1455_v32  ;;  %v1489_v41 = vor.u32 1.1754944e-38, %v1488_v36  ;;  %v1744_v52 = vmul.f32 %v1445_v0, %v3504_v61 }
 0x18e   :  { %v1774_v5 = vmul.f32 %v1742_v53, %v1048_v49  ;;  %v4134_v48 = vpop.eup %3066  ;;  %v1493_v6 = vmul.f32 %v4128_v54, %v4078_v33  ;;  %v2696_v49 = vmul.f32 -1.442695, %v4166_v59  ;;  %vm1487_vm15 = vcmp.eq.f32.partialorder %v1486_v30, 8.507059e+37 }
 0x18f   :  { %v1775_v19 = vmul.f32 %v1743_v24, %v1097_v17  ;;  %v3069_v28 = vpop.eup %3068  ;;  %v1508_v43 = vmul.f32 %v4134_v48, %v4085_v18  ;;  %v1474_v24 = vor.u32 1.1754944e-38, %v1473_v22  ;;  %v1501_v62 = vand.u32 2147483647, %v4078_v33 }
 0x190   :  { %v1800_v56 = vpack.c.bf16 %v1774_v5, %v1772_v45  ;;  %v4195_v39 = vadd.f32 1.0, %v3069_v28  ;;  %v4197_v31 = vpop.eup %3070  ;;  %v1494_v60 = vsub.f32 1.0, %v1493_v6  ;;  %v1490_v14 = vsel %vm1487_vm15, %v1489_v41, %v1485_v27  ;;  %v4753_v5 = vld [vmem:[#allocation21_spill] sm:$0xff]  ;;  %v4755_v28 = vld [vmem:[#allocation23_spill] sm:$0xff] }
 0x191   :  { %v4132_v25 = vpack.c.bf16 %v1775_v19, %v1773_v10  ;;  %v3073_v17 = vpop.eup %3072  ;;  %v1475_v34 = vsel %vm1472_vm14, %v1474_v24, %v1470_v55  ;;  %vm1497_vm0 = vweird.f32 %v4078_v33  ;;  %v1509_v38 = vsub.f32 1.0, %v1508_v43 }
 0x192   :  { %v1523_v45 = vmul.f32 %v4197_v31, %v4109_v11  ;;  %3076 = vrcp.f32 %v4195_v39  ;;  %v3075_v10 = vpop.eup %3074  ;;  %v1745_v19 = vmul.f32 %v1460_v57, %v4753_v5  ;;  %2006 = vmatmul.bf16.gmra.mxu0 %v1800_v56  ;;  %2200 = vmatmul.bf16.gmra.mxu2 %v1800_v56  ;;  %v1746_v44 = vmul.f32 %v1475_v34, %v4754_v40 }
 0x193   :  { %v1050_v53 = vpop.f32.mrf.mxu2  ;;  %v858_v37 = vpop.f32.mrf.mxu0  ;;  %3078 = vpow2.f32 %v2694_v51  ;;  %v1495_v35 = vmul.f32 %v4128_v54, %v1494_v60  ;;  %v4217_v29 = vadd.f32 1.0, %v3073_v17  ;;  %v1747_v26 = vmul.f32 %v1490_v14, %v4755_v28 }
 0x194   :  { %v1099_v7 = vpop.f32.mrf.mxu3  ;;  %v907_v8 = vpop.f32.mrf.mxu1  ;;  %v1051_v61 = vadd.f32 %v1050_v53, %v4111_v58  ;;  %3080 = vpow2.f32 %v2696_v49  ;;  %v4222_v47 = vadd.f32 %v4757_v63, %v4756_v9  ;;  %v1503_v58 = vand.u32 2147483648, %v4078_v33  ;;  %v4769_v9 = vld [vmem:[#allocation32_spill] sm:$0xff] }
 0x195   :  { %v1100_v1 = vadd.f32 %v1099_v7, %v4113_v4  ;;  %v1510_v4 = vmul.f32 %v4134_v48, %v1509_v38  ;;  %v1524_v6 = vsub.f32 1.0, %v1523_v45  ;;  %v4226_v21 = vadd.f32 1.0, %v3075_v10 }
 0x196   :  { %v1776_v53 = vmul.f32 %v1744_v52, %v1051_v61  ;;  %v1496_v0 = vadd.f32 %v4128_v54, %v1495_v35  ;;  %vm1498_vm1 = vweird.f32 %v4128_v54  ;;  %3082 = vrcp.f32 %v4217_v29  ;;  %v4768_v61 = vld [vmem:[#allocation34_spill] sm:$0xff] }
 0x197   :  { %v1777_v7 = vmul.f32 %v1745_v19, %v1100_v1  ;;  %v1516_v43 = vand.u32 2147483647, %v4085_v18  ;;  %v2699_v24 = vmul.f32 -1.442695, %v4222_v47  ;;  %v1511_v41 = vadd.f32 %v4134_v48, %v1510_v4  ;;  %vm4248_vm3 = vmor %vm1497_vm0, %vm1498_vm1  ;;  %v4767_v19 = vld [vmem:[#allocation30_spill] sm:$0xff] }
 0x198   :  { %v4230_v30 = vpop.eup %3076  ;;  %vm1513_vm2 = vweird.f32 %v4134_v48  ;;  %v1525_v60 = vmul.f32 %v4197_v31, %v1524_v6  ;;  %3084 = vrcp.f32 %v4226_v21  ;;  %vm4252_vm4 = vcmp.eq.f32.partialorder %v1501_v62, 8.507059e+37 }
 0x199   :  { %v3079_v13 = vpop.eup %3078  ;;  %v1518_v52 = vand.u32 2147483648, %v4085_v18  ;;  %v1538_v34 = vmul.f32 %v4230_v30, %v4195_v39  ;;  %v1500_v14 = vsel %vm4248_vm3, %v4128_v54, %v1496_v0  ;;  %vm1512_vm5 = vweird.f32 %v4085_v18 }
 0x19a   :  { %v3081_v57 = vpop.eup %3080  ;;  %v4263_v33 = vadd.f32 1.0, %v3079_v13  ;;  %v1504_v62 = vor.u32 1.1754944e-38, %v1503_v58  ;;  %vm4267_vm6 = vmor %vm1512_vm5, %vm1513_vm2  ;;  %vm4271_vm7 = vcmp.eq.f32.partialorder %v1516_v43, 8.507059e+37  ;;  %vm1528_vm8 = vweird.f32 %v4197_v31 }
 0x19b   :  { %v1052_v20 = vpop.f32.mrf.mxu2  ;;  %v4228_v2 = vpop.f32.mrf.mxu0  ;;  %2055 = vmatmul.bf16.gmra.mxu1 %v4132_v25  ;;  %2249 = vmatmul.bf16.gmra.mxu3 %v4132_v25  ;;  %v4275_v10 = vadd.f32 1.0, %v3081_v57  ;;  %v1515_v5 = vsel %vm4267_vm6, %v4134_v48, %v1511_v41  ;;  %v1526_v25 = vadd.f32 %v4197_v31, %v1525_v60  ;;  %v4286_v1 = vadd.f32 %v4768_v61, %v4767_v19  ;;  %v4772_v57 = vld [vmem:[#allocation35_spill] sm:$0xff]  ;;  %v4773_v41 = vld [vmem:[#allocation37_spill] sm:$0xff] }
 0x19c   :  { %v1101_v22 = vpop.f32.mrf.mxu3  ;;  %v1053_v56 = vadd.f32 %v1052_v20, %v858_v37  ;;  %v4758_v37 = vld [vmem:[#allocation31_spill] sm:$0xff]  ;;  %v4238_v27 = vpop.f32.mrf.mxu1  ;;  %v1505_v35 = vsel %vm4252_vm4, %v1504_v62, %v1500_v14  ;;  %v1519_v20 = vor.u32 1.1754944e-38, %v1518_v52  ;;  %v1539_v28 = vsub.f32 1.0, %v1538_v34 }
 0x19d   :  { %v1102_v36 = vadd.f32 %v1101_v22, %v907_v8  ;;  %v2697_v55 = vmul.f32 -1.442695, %v4758_v37  ;;  %v4277_v54 = vpop.eup %3082  ;;  %v1533_v22 = vand.u32 2147483648, %v4109_v11  ;;  %vm1527_vm9 = vweird.f32 %v4109_v11 }
 0x19e   :  { %v1778_v32 = vmul.f32 %v1746_v44, %v1053_v56  ;;  %v1531_v48 = vand.u32 2147483647, %v4109_v11  ;;  %v2698_v63 = vmul.f32 -1.442695, %v4769_v9  ;;  %v1520_v56 = vsel %vm4271_vm7, %v1519_v20, %v1515_v5  ;;  %vm4301_vm10 = vmor %vm1527_vm9, %vm1528_vm8 }
 0x19f   :  { %v1779_v23 = vmul.f32 %v1747_v26, %v1102_v36  ;;  %3086 = vpow2.f32 %v2697_v55  ;;  %v4293_v26 = vpop.eup %3084  ;;  %v1553_v58 = vmul.f32 %v4277_v54, %v4217_v29  ;;  %v1530_v11 = vsel %vm4301_vm10, %v4197_v31, %v1526_v25 }
 0x1a0   :  { %v1802_v51 = vpack.c.bf16 %v1778_v32, %v1776_v53  ;;  %3088 = vpow2.f32 %v2699_v24  ;;  %v2700_v6 = vmul.f32 -1.442695, %v4286_v1  ;;  %v1534_v32 = vor.u32 1.1754944e-38, %v1533_v22 }
 0x1a1   :  { %v4240_v8 = vpack.c.bf16 %v1779_v23, %v1777_v7  ;;  %3090 = vrcp.f32 %v4263_v33  ;;  %v1748_v7 = vmul.f32 %v1505_v35, %v3516_v15  ;;  %v1540_v23 = vmul.f32 %v4230_v30, %v1539_v28 }
 0x1a2   :  { %3092 = vrcp.f32 %v4275_v10  ;;  %v1583_v0 = vmul.f32 %v4293_v26, %v4226_v21  ;;  %2011 = vmatmul.bf16.gmra.mxu0 %v1802_v51  ;;  %2205 = vmatmul.bf16.gmra.mxu2 %v1802_v51  ;;  %v4319_v13 = vmul.f32 %v1520_v56, %v3518_v16  ;;  %vm1532_vm11 = vcmp.eq.f32.partialorder %v1531_v48, 8.507059e+37 }
 0x1a3   :  { %v1055_v18 = vpop.f32.mrf.mxu2  ;;  %v863_v44 = vpop.f32.mrf.mxu0  ;;  %v1546_v31 = vand.u32 2147483647, %v4195_v39  ;;  %3094 = vpow2.f32 %v2698_v63  ;;  %v1535_v43 = vsel %vm1532_vm11, %v1534_v32, %v1530_v11  ;;  %v1554_v24 = vsub.f32 1.0, %v1553_v58 }
 0x1a4   :  { %v4288_v40 = vpop.f32.mrf.mxu3  ;;  %v4316_v55 = vpop.f32.mrf.mxu1  ;;  %v4326_v60 = vadd.f32 %v4773_v41, %v4772_v57  ;;  %vm1542_vm12 = vweird.f32 %v4195_v39  ;;  %v1548_v16 = vand.u32 2147483648, %v4195_v39  ;;  %3096 = vpow2.f32 %v2700_v6  ;;  %v4778_v39 = vld [vmem:[#allocation39_spill] sm:$0xff]  ;;  %v4781_v57 = vld [vmem:[#allocation36_spill] sm:$0xff]  ;;  %v4782_v41 = vld [vmem:[#allocation38_spill] sm:$0xff] }
 0x1a5   :  { %v3087_v4 = vpop.eup %3086  ;;  %v1541_v62 = vadd.f32 %v4230_v30, %v1540_v23  ;;  %vm1543_vm13 = vweird.f32 %v4230_v30  ;;  %vm1557_vm14 = vweird.f32 %v4217_v29  ;;  %v1584_v38 = vsub.f32 1.0, %v1583_v0 }
 0x1a6   :  { %v3089_v53 = vpop.eup %3088  ;;  %v4322_v15 = vadd.f32 1.0, %v3087_v4  ;;  %v1750_v5 = vmul.f32 %v1535_v43, %v3985_v42  ;;  %vm4342_vm15 = vcmp.eq.f32.partialorder %v1546_v31, 8.507059e+37  ;;  %v1561_v19 = vand.u32 2147483647, %v4217_v29  ;;  %vm4354_vm0 = vmor %vm1542_vm12, %vm1543_vm13 }
 0x1a7   :  { %v4328_v17 = vpop.eup %3090  ;;  %v4332_v51 = vadd.f32 1.0, %v3089_v53  ;;  %v1563_v61 = vand.u32 2147483648, %v4217_v29  ;;  %v1555_v35 = vmul.f32 %v4277_v54, %v1554_v24  ;;  %v2703_v20 = vmul.f32 -1.442695, %v4326_v60 }
 0x1a8   :  { %v4336_v14 = vpop.eup %3092  ;;  %3098 = vrcp.f32 %v4322_v15  ;;  %v1056_v22 = vadd.f32 %v1055_v18, %v4228_v2  ;;  %v1568_v48 = vmul.f32 %v4328_v17, %v4263_v33  ;;  %v1545_v2 = vsel %vm4354_vm0, %v4230_v30, %v1541_v62 }
 0x1a9   :  { %v3095_v28 = vpop.eup %3094  ;;  %v1598_v63 = vmul.f32 %v4336_v14, %v4275_v10  ;;  %3100 = vrcp.f32 %v4332_v51  ;;  %v1585_v18 = vmul.f32 %v4293_v26, %v1584_v38  ;;  %v2701_v56 = vmul.f32 -1.442695, %v4778_v39 }
 0x1aa   :  { %v3097_v58 = vpop.eup %3096  ;;  %vm1558_vm1 = vweird.f32 %v4277_v54  ;;  %vm4369_vm2 = vcmp.eq.f32.partialorder %v1561_v19, 8.507059e+37  ;;  %v1564_v11 = vor.u32 1.1754944e-38, %v1563_v61  ;;  %v1591_v6 = vand.u32 2147483647, %v4226_v21 }
 0x1ab   :  { %v1057_v49 = vpop.f32.mrf.mxu2  ;;  %v4334_v34 = vpop.f32.mrf.mxu0  ;;  %v1593_v53 = vand.u32 2147483648, %v4226_v21  ;;  %2060 = vmatmul.bf16.gmra.mxu1 %v4240_v8  ;;  %2254 = vmatmul.bf16.gmra.mxu3 %v4240_v8  ;;  %v1556_v30 = vadd.f32 %v4277_v54, %v1555_v35  ;;  %vm1588_vm3 = vweird.f32 %v4293_v26  ;;  %3102 = vpow2.f32 %v2703_v20  ;;  %vm4402_vm4 = vmor %vm1557_vm14, %vm1558_vm1 }
 0x1ac   :  { %v1106_v52 = vpop.f32.mrf.mxu3  ;;  %v1058_v45 = vadd.f32 %v1057_v49, %v863_v44  ;;  %v1549_v44 = vor.u32 1.1754944e-38, %v1548_v16  ;;  %v1780_v32 = vmul.f32 %v1748_v7, %v1056_v22  ;;  %v4379_v23 = vpop.f32.mrf.mxu1  ;;  %v1569_v43 = vsub.f32 1.0, %v1568_v48 }
 0x1ad   :  { %v1599_v24 = vsub.f32 1.0, %v1598_v63  ;;  %v4387_v49 = vadd.f32 %v4782_v41, %v4781_v57  ;;  %v1586_v7 = vadd.f32 %v4293_v26, %v1585_v18  ;;  %v4394_v38 = vadd.f32 1.0, %v3097_v58 }
 0x1ae   :  { %v1782_v36 = vmul.f32 %v1750_v5, %v1058_v45  ;;  %v1550_v31 = vsel %vm4342_vm15, %v1549_v44, %v1545_v2  ;;  %v4391_v62 = vpop.eup %3098  ;;  %3104 = vpow2.f32 %v2701_v56  ;;  %vm1572_vm5 = vweird.f32 %v4263_v33 }
 0x1af   :  { %v4396_v5 = vpop.eup %3100  ;;  %v1576_v19 = vand.u32 2147483647, %v4263_v33  ;;  %v1578_v61 = vand.u32 2147483648, %v4263_v33  ;;  %v4409_v35 = vadd.f32 1.0, %v3095_v28  ;;  %v1107_v20 = vadd.f32 %v1106_v52, %v4316_v55 }
 0x1b0   :  { %v1804_v45 = vpack.c.bf16 %v1782_v36, %v1780_v32  ;;  %v1560_v22 = vsel %vm4402_vm4, %v4277_v54, %v1556_v30  ;;  %vm1587_vm6 = vweird.f32 %v4226_v21  ;;  %vm4416_vm7 = vcmp.eq.f32.partialorder %v1591_v6, 8.507059e+37 }
 0x1b1   :  { %v1594_v42 = vor.u32 1.1754944e-38, %v1593_v53  ;;  %v1751_v44 = vmul.f32 %v1550_v31, %v4067_v3  ;;  %v1570_v48 = vmul.f32 %v4328_v17, %v1569_v43  ;;  %vm4424_vm8 = vmor %vm1587_vm6, %vm1588_vm3  ;;  %v2704_v55 = vmul.f32 -1.442695, %v4387_v49  ;;  %v3103_v54 = vpop.eup %3102 }
 0x1b2   :  { %v1105_v21 = vadd.f32 %v4288_v40, %v4238_v27  ;;  %v1590_v52 = vsel %vm4424_vm8, %v4293_v26, %v1586_v7  ;;  %v1600_v3 = vmul.f32 %v4336_v14, %v1599_v24  ;;  %v1643_v63 = vmul.f32 %v4396_v5, %v4332_v51  ;;  %2016 = vmatmul.bf16.gmra.mxu0 %v1804_v45  ;;  %v4789_v27 = vld [vmem:[#allocation40_spill] sm:$0xff] }
 0x1b3   :  { %v4381_v0 = vpop.f32.mrf.mxu2  ;;  %v868_v16 = vpop.f32.mrf.mxu0  ;;  %3106 = vrcp.f32 %v4394_v38  ;;  %2210 = vmatmul.bf16.gmra.mxu2 %v1804_v45  ;;  %v1613_v2 = vmul.f32 %v4391_v62, %v4322_v15  ;;  %v2702_v40 = vmul.f32 -1.442695, %v4789_v27  ;;  %v1783_v18 = vmul.f32 %v1751_v44, %v1107_v20 }
 0x1b4   :  { %v4389_v8 = vpop.f32.mrf.mxu3  ;;  %3108 = vrcp.f32 %v4409_v35  ;;  %v3105_v56 = vpop.eup %3104  ;;  %v1565_v26 = vsel %vm4369_vm2, %v1564_v11, %v1560_v22  ;;  %vm1573_vm9 = vweird.f32 %v4328_v17  ;;  %vm1603_vm10 = vweird.f32 %v4336_v14 }
 0x1b5   :  { %v1608_v36 = vand.u32 2147483648, %v4275_v10  ;;  %v1595_v6 = vsel %vm4416_vm7, %v1594_v42, %v1590_v52  ;;  %v4449_v53 = vadd.f32 1.0, %v3103_v54  ;;  %3110 = vpow2.f32 %v2704_v55  ;;  %v917_v43 = vpop.f32.mrf.mxu1  ;;  %vm4464_vm11 = vmor %vm1572_vm5, %vm1573_vm9 }
 0x1b6   :  { %v1781_v30 = vmul.f32 %v4319_v13, %v1105_v21  ;;  %v1571_v31 = vadd.f32 %v4328_v17, %v1570_v48  ;;  %v1601_v4 = vadd.f32 %v4336_v14, %v1600_v3  ;;  %v1644_v11 = vsub.f32 1.0, %v1643_v63 }
 0x1b7   :  { %v1614_v57 = vsub.f32 1.0, %v1613_v2  ;;  %v4454_v41 = vadd.f32 1.0, %v3105_v56  ;;  %3112 = vpow2.f32 %v2702_v40  ;;  %v1754_v20 = vmul.f32 %v1595_v6, %v4103_v12 }
 0x1b8   :  { %v1805_v7 = vpack.c.bf16 %v1783_v18, %v1781_v30  ;;  %vm1602_vm12 = vweird.f32 %v4275_v10  ;;  %v1061_v22 = vadd.f32 %v4381_v0, %v4334_v34  ;;  %v1752_v42 = vmul.f32 %v1565_v26, %v4739_v46 }
 0x1b9   :  { %v4458_v25 = vpop.eup %3106  ;;  %vm4476_vm13 = vcmp.eq.f32.partialorder %v1576_v19, 8.507059e+37  ;;  %v1579_v33 = vor.u32 1.1754944e-38, %v1578_v61  ;;  %vm4482_vm14 = vmor %vm1602_vm12, %vm1603_vm10  ;;  %3114 = vrcp.f32 %v4449_v53  ;;  %v1645_v34 = vmul.f32 %v4396_v5, %v1644_v11 }
 0x1ba   :  { %v4473_v29 = vpop.eup %3108  ;;  %v1605_v46 = vsel %vm4482_vm14, %v4336_v14, %v1601_v4  ;;  %v1609_v61 = vor.u32 1.1754944e-38, %v1608_v36  ;;  %v1615_v48 = vmul.f32 %v4391_v62, %v1614_v57  ;;  %v1658_v28 = vmul.f32 %v4458_v25, %v4394_v38 }
 0x1bb   :  { %v1062_v58 = vpop.f32.mrf.mxu2  ;;  %v4456_v45 = vpop.f32.mrf.mxu0  ;;  %3116 = vrcp.f32 %v4454_v41  ;;  %2065 = vmatmul.bf16.gmra.mxu1 %v1805_v7  ;;  %2259 = vmatmul.bf16.gmra.mxu3 %v1805_v7  ;;  %vm1617_vm0 = vweird.f32 %v4322_v15  ;;  %v1784_v14 = vmul.f32 %v1752_v42, %v1061_v22  ;;  %vm1618_vm1 = vweird.f32 %v4391_v62 }
 0x1bc   :  { %v1111_v32 = vpop.f32.mrf.mxu3  ;;  %v1063_v24 = vadd.f32 %v1062_v58, %v868_v16  ;;  %v1606_v16 = vand.u32 2147483647, %v4275_v10  ;;  %v1575_v10 = vsel %vm4464_vm11, %v4328_v17, %v1571_v31  ;;  %v3111_v19 = vpop.eup %3110  ;;  %v1628_v17 = vmul.f32 %v4473_v29, %v4409_v35  ;;  %vm4538_vm5 = vmor %vm1617_vm0, %vm1618_vm1 }
 0x1bd   :  { %v3113_v55 = vpop.eup %3112  ;;  %v1580_v21 = vsel %vm4476_vm13, %v1579_v33, %v1575_v10  ;;  %v1623_v52 = vand.u32 2147483648, %v4322_v15  ;;  %v1646_v63 = vadd.f32 %v4396_v5, %v1645_v34  ;;  %vm1648_vm2 = vweird.f32 %v4396_v5  ;;  %v4519_v11 = vpop.f32.mrf.mxu1 }
 0x1be   :  { %v1786_v0 = vmul.f32 %v1754_v20, %v1063_v24  ;;  %vm1607_vm15 = vcmp.eq.f32.partialorder %v1606_v16, 8.507059e+37  ;;  %v4507_v2 = vadd.f32 1.0, %v3111_v19  ;;  %v1616_v26 = vadd.f32 %v4391_v62, %v1615_v48 }
 0x1bf   :  { %v1610_v54 = vsel %vm1607_vm15, %v1609_v61, %v1605_v46  ;;  %v4511_v56 = vpop.eup %3114  ;;  %v1653_v36 = vand.u32 2147483648, %v4332_v51  ;;  %v1659_v58 = vsub.f32 1.0, %v1658_v28  ;;  %v1112_v6 = vadd.f32 %v1111_v32, %v917_v43 }
 0x1c0   :  { %v1806_v40 = vpack.c.bf16 %v1786_v0, %v1784_v14  ;;  %v1629_v30 = vsub.f32 1.0, %v1628_v17  ;;  %vm1647_vm3 = vweird.f32 %v4332_v51  ;;  %v1651_v31 = vand.u32 2147483647, %v4332_v51 }
 0x1c1   :  { %v4517_v4 = vadd.f32 1.0, %v3113_v55  ;;  %v4521_v24 = vpop.eup %3116  ;;  %v1755_v57 = vmul.f32 %v1610_v54, %v4166_v59  ;;  %v1621_v7 = vand.u32 2147483647, %v4322_v15  ;;  %v1624_v13 = vor.u32 1.1754944e-38, %v1623_v52  ;;  %vm4527_vm4 = vmor %vm1647_vm3, %vm1648_vm2 }
 0x1c2   :  { %v1110_v51 = vadd.f32 %v4389_v8, %v4379_v23  ;;  %v1753_v20 = vmul.f32 %v1580_v21, %v4752_v50  ;;  %v1650_v16 = vsel %vm4527_vm4, %v4396_v5, %v1646_v63  ;;  %v1703_v22 = vmul.f32 %v4511_v56, %v4449_v53  ;;  %2021 = vmatmul.bf16.gmra.mxu0 %v1806_v40 }
 0x1c3   :  { %v1065_v3 = vpop.f32.mrf.mxu2  ;;  %v873_v43 = vpop.f32.mrf.mxu0  ;;  %3118 = vrcp.f32 %v4507_v2  ;;  %2215 = vmatmul.bf16.gmra.mxu2 %v1806_v40  ;;  %v1620_v50 = vsel %vm4538_vm5, %v4391_v62, %v1616_v26  ;;  %v1654_v15 = vor.u32 1.1754944e-38, %v1653_v36  ;;  %v1660_v23 = vmul.f32 %v4458_v25, %v1659_v58 }
 0x1c4   :  { %v4509_v18 = vpop.f32.mrf.mxu3  ;;  %v1787_v8 = vmul.f32 %v1755_v57, %v1112_v6  ;;  %v1630_v42 = vmul.f32 %v4473_v29, %v1629_v30  ;;  %vm1652_vm6 = vcmp.eq.f32.partialorder %v1651_v31, 8.507059e+37  ;;  %v1673_v5 = vmul.f32 %v4521_v24, %v4454_v41 }
 0x1c5   :  { %3120 = vrcp.f32 %v4517_v4  ;;  %vm1622_vm7 = vcmp.eq.f32.partialorder %v1621_v7, 8.507059e+37  ;;  %v1655_v44 = vsel %vm1652_vm6, %v1654_v15, %v1650_v16  ;;  %v1785_v33 = vmul.f32 %v1753_v20, %v1110_v51 }
 0x1c6   :  { %v1625_v10 = vsel %vm1622_vm7, %v1624_v13, %v1620_v50  ;;  %vm1633_vm8 = vweird.f32 %v4473_v29  ;;  %v1704_v62 = vsub.f32 1.0, %v1703_v22  ;;  %v1661_v34 = vadd.f32 %v4458_v25, %v1660_v23 }
 0x1c7   :  { %vm1663_vm9 = vweird.f32 %v4458_v25  ;;  %v1668_v0 = vand.u32 2147483648, %v4394_v38  ;;  %v1807_v19 = vpack.c.bf16 %v1787_v8, %v1785_v33  ;;  %v1631_v48 = vadd.f32 %v4473_v29, %v1630_v42 }
 0x1c8   :  { %v1758_v28 = vmul.f32 %v1655_v44, %v4222_v47  ;;  %v1674_v17 = vsub.f32 1.0, %v1673_v5  ;;  %v1066_v14 = vadd.f32 %v1065_v3, %v4456_v45  ;;  %v1636_v21 = vand.u32 2147483647, %v4409_v35  ;;  %v922_v3 = vpop.f32.mrf.mxu1 }
 0x1c9   :  { %v4560_v61 = vpop.eup %3118  ;;  %v1638_v54 = vand.u32 2147483648, %v4409_v35  ;;  %vm1662_vm10 = vweird.f32 %v4394_v38  ;;  %v1666_v52 = vand.u32 2147483647, %v4394_v38  ;;  %v1756_v40 = vmul.f32 %v1625_v10, %v4758_v37 }
 0x1ca   :  { %vm1632_vm11 = vweird.f32 %v4409_v35  ;;  %vm4575_vm12 = vmor %vm1662_vm10, %vm1663_vm9  ;;  %v1705_v45 = vmul.f32 %v4511_v56, %v1704_v62  ;;  %v1718_v35 = vmul.f32 %v4560_v61, %v4507_v2  ;;  %v1669_v6 = vor.u32 1.1754944e-38, %v1668_v0 }
 0x1cb   :  { %v1067_v12 = vpop.f32.mrf.mxu2  ;;  %v4569_v63 = vpop.eup %3120  ;;  %vm4582_vm13 = vmor %vm1632_vm11, %vm1633_vm8  ;;  %v1665_v37 = vsel %vm4575_vm12, %v4458_v25, %v1661_v34  ;;  %2070 = vmatmul.bf16.gmra.mxu1 %v1807_v19  ;;  %2264 = vmatmul.bf16.gmra.mxu3 %v1807_v19  ;;  %v1675_v30 = vmul.f32 %v4521_v24, %v1674_v17  ;;  %v1788_v31 = vmul.f32 %v1756_v40, %v1066_v14  ;;  %vm1637_vm14 = vcmp.eq.f32.partialorder %v1636_v21, 8.507059e+37 }
 0x1cc   :  { %v1068_v46 = vadd.f32 %v1067_v12, %v873_v43  ;;  %v1116_v55 = vpop.f32.mrf.mxu3  ;;  %v876_v36 = vpop.f32.mrf.mxu0  ;;  %v1635_v58 = vsel %vm4582_vm13, %v4473_v29, %v1631_v48  ;;  %v1639_v57 = vor.u32 1.1754944e-38, %v1638_v54  ;;  %vm1667_vm15 = vcmp.eq.f32.partialorder %v1666_v52, 8.507059e+37 }
 0x1cd   :  { %v1688_v25 = vmul.f32 %v4569_v63, %v4517_v4  ;;  %v1670_v13 = vsel %vm1667_vm15, %v1669_v6, %v1665_v37  ;;  %v1706_v32 = vadd.f32 %v4511_v56, %v1705_v45  ;;  %vm1708_vm0 = vweird.f32 %v4511_v56 }
 0x1ce   :  { %v1790_v26 = vmul.f32 %v1758_v28, %v1068_v46  ;;  %v1640_v43 = vsel %vm1637_vm14, %v1639_v57, %v1635_v58  ;;  %v1713_v29 = vand.u32 2147483648, %v4449_v53  ;;  %v1719_v20 = vsub.f32 1.0, %v1718_v35 }
 0x1cf   :  { %v1117_v59 = vadd.f32 %v1116_v55, %v922_v3  ;;  %v1676_v16 = vadd.f32 %v4521_v24, %v1675_v30  ;;  %vm1678_vm1 = vweird.f32 %v4521_v24  ;;  %vm1707_vm2 = vweird.f32 %v4449_v53 }
 0x1d0   :  { %v1808_v51 = vpack.c.bf16 %v1790_v26, %v1788_v31  ;;  %v1711_v22 = vand.u32 2147483647, %v4449_v53  ;;  %v1759_v50 = vmul.f32 %v1670_v13, %v4286_v1  ;;  %v1683_v15 = vand.u32 2147483648, %v4454_v41  ;;  %vm4606_vm3 = vmor %vm1707_vm2, %vm1708_vm0 }
 0x1d1   :  { %v1689_v23 = vsub.f32 1.0, %v1688_v25  ;;  %v1115_v42 = vadd.f32 %v4509_v18, %v4519_v11  ;;  %vm1677_vm4 = vweird.f32 %v4454_v41  ;;  %v1681_v5 = vand.u32 2147483647, %v4454_v41 }
 0x1d2   :  { %v1710_v53 = vsel %vm4606_vm3, %v4511_v56, %v1706_v32  ;;  %2026 = vmatmul.bf16.gmra.mxu0 %v1808_v51  ;;  %v1757_v44 = vmul.f32 %v1640_v43, %v4769_v9  ;;  %vm4620_vm5 = vmor %vm1677_vm4, %vm1678_vm1  ;;  %v1714_v18 = vor.u32 1.1754944e-38, %v1713_v29  ;;  %v1720_v11 = vmul.f32 %v4560_v61, %v1719_v20  ;;  %v925_v56 = vpop.f32.mrf.mxu1 }
 0x1d3   :  { %v1070_v7 = vpop.f32.mrf.mxu2  ;;  %2220 = vmatmul.bf16.gmra.mxu2 %v1808_v51  ;;  %v1791_v12 = vmul.f32 %v1759_v50, %v1117_v59  ;;  %v1680_v41 = vsel %vm4620_vm5, %v4521_v24, %v1676_v16  ;;  %vm1712_vm6 = vcmp.eq.f32.partialorder %v1711_v22, 8.507059e+37  ;;  %v1684_v10 = vor.u32 1.1754944e-38, %v1683_v15 }
 0x1d4   :  { %v1119_v1 = vpop.f32.mrf.mxu3  ;;  %v1690_v62 = vmul.f32 %v4569_v63, %v1689_v23  ;;  %v1715_v9 = vsel %vm1712_vm6, %v1714_v18, %v1710_v53  ;;  %v1789_v46 = vmul.f32 %v1757_v44, %v1115_v42  ;;  %v878_v34 = vpop.f32.mrf.mxu0  ;;  %vm1682_vm7 = vcmp.eq.f32.partialorder %v1681_v5, 8.507059e+37 }
 0x1d5   :  { %v1685_v48 = vsel %vm1682_vm7, %v1684_v10, %v1680_v41  ;;  %v1721_v28 = vadd.f32 %v4560_v61, %v1720_v11  ;;  %vm1723_vm8 = vweird.f32 %v4560_v61  ;;  %v1762_v14 = vmul.f32 %v1715_v9, %v4326_v60 }
 0x1d6   :  { %v1809_v17 = vpack.c.bf16 %v1791_v12, %v1789_v46  ;;  %v1728_v24 = vand.u32 2147483648, %v4507_v2  ;;  %v1071_v55 = vadd.f32 %v1070_v7, %v876_v36  ;;  %v1691_v21 = vadd.f32 %v4569_v63, %v1690_v62 }
 0x1d7   :  { %vm1693_vm9 = vweird.f32 %v4569_v63  ;;  %vm1722_vm10 = vweird.f32 %v4507_v2  ;;  %v1726_v54 = vand.u32 2147483647, %v4507_v2  ;;  %v1760_v52 = vmul.f32 %v1685_v48, %v4778_v39 }
 0x1d8   :  { %v1698_v40 = vand.u32 2147483648, %v4517_v4  ;;  %vm1724_vm11 = vmor %vm1722_vm10, %vm1723_vm8  ;;  %vm1692_vm12 = vweird.f32 %v4517_v4  ;;  %v1696_v60 = vand.u32 2147483647, %v4517_v4  ;;  %v1729_v3 = vor.u32 1.1754944e-38, %v1728_v24 }
 0x1d9   :  { %v1725_v45 = vsel %vm1724_vm11, %v4560_v61, %v1721_v28  ;;  %vm1694_vm13 = vmor %vm1692_vm12, %vm1693_vm9  ;;  %v1792_v26 = vmul.f32 %v1760_v52, %v1071_v55  ;;  %vm1727_vm14 = vcmp.eq.f32.partialorder %v1726_v54, 8.507059e+37  ;;  %v1120_v30 = vadd.f32 %v1119_v1, %v925_v56 }
 0x1da   :  { %v1695_v2 = vsel %vm1694_vm13, %v4569_v63, %v1691_v21  ;;  %v1699_v39 = vor.u32 1.1754944e-38, %v1698_v40  ;;  %v1730_v37 = vsel %vm1727_vm14, %v1729_v3, %v1725_v45  ;;  %v927_v35 = vpop.f32.mrf.mxu1  ;;  %vm1697_vm15 = vcmp.eq.f32.partialorder %v1696_v60, 8.507059e+37 }
 0x1db   :  { %v1072_v0 = vpop.f32.mrf.mxu2  ;;  %2075 = vmatmul.bf16.gmra.mxu1 %v1809_v17  ;;  %2269 = vmatmul.bf16.gmra.mxu3 %v1809_v17  ;;  %v1763_v4 = vmul.f32 %v1730_v37, %v4387_v49 }
 0x1dc   :  { %v1073_v19 = vadd.f32 %v1072_v0, %v878_v34  ;;  %v1121_v38 = vpop.f32.mrf.mxu3  ;;  %v1700_v6 = vsel %vm1697_vm15, %v1699_v39, %v1695_v2 }
 0x1dd   :  { %v1122_v58 = vadd.f32 %v1121_v38, %v927_v35  ;;  %v1761_v61 = vmul.f32 %v1700_v6, %v4789_v27 }
 0x1de   :  { %v1794_v47 = vmul.f32 %v1762_v14, %v1073_v19 }
 0x1df   :  { %v1795_v31 = vmul.f32 %v1763_v4, %v1122_v58  ;;  %v1793_v57 = vmul.f32 %v1761_v61, %v1120_v30 }
 0x1e0   :  { %v1810_v36 = vpack.c.bf16 %v1794_v47, %v1792_v26 }
 0x1e1   :  { %v1811_v25 = vpack.c.bf16 %v1795_v31, %v1793_v57 }
 0x1e2   :  { %2031 = vmatmul.bf16.gmra.mxu0 %v1810_v36 }
 0x1e3   :  { %2225 = vmatmul.bf16.gmra.mxu2 %v1810_v36 }
 0x1eb   :  { %2080 = vmatmul.bf16.gmra.mxu1 %v1811_v25  ;;  %2274 = vmatmul.bf16.gmra.mxu3 %v1811_v25 }
 0x1ef   :  { %v1997_v63 = vpop.f32.mrf.mxu0 }
 0x1f5   :  { %v2191_v7 = vpop.f32.mrf.mxu2 }
 0x1f7   :  { %v1999_v13 = vpop.f32.mrf.mxu0 }
 0x1f8   :  { %v2046_v32 = vpop.f32.mrf.mxu1 }
 0x1f9   :  { %v2047_v59 = vadd.f32 %v2046_v32, %v1997_v63 }
 0x1fb   :  { %v2192_v16 = vadd.f32 %v2191_v7, %v2047_v59 }
 0x1fd   :  { %v2193_v51 = vpop.f32.mrf.mxu2 }
 0x1fe   :  { %v2240_v43 = vpop.f32.mrf.mxu3 }
 0x1ff   :  { %v2002_v29 = vpop.f32.mrf.mxu0  ;;  %v2241_v27 = vadd.f32 %v2240_v43, %v2192_v16 }
 0x200   :  { %v2048_v20 = vpop.f32.mrf.mxu1 }
 0x201   :  { %v2049_v49 = vadd.f32 %v2048_v20, %v1999_v13 }
 0x203   :  { %v2194_v22 = vadd.f32 %v2193_v51, %v2049_v49 }
 0x205   :  { %v2196_v50 = vpop.f32.mrf.mxu2 }
 0x206   :  { %v2242_v15 = vpop.f32.mrf.mxu3 }
 0x207   :  { %v2243_v23 = vadd.f32 %v2242_v15, %v2194_v22  ;;  %v2004_v8 = vpop.f32.mrf.mxu0 }
 0x208   :  { %v2051_v42 = vpop.f32.mrf.mxu1 }
 0x209   :  { %v2940_v5 = vpack.c.bf16 %v2243_v23, %v2241_v27  ;;  %v2052_v18 = vadd.f32 %v2051_v42, %v2002_v29 }
 0x20b   :  { %2941 = vst [vmem:[#allocation15] sm:$0xff] %v2940_v5   ;;  %v2197_v12 = vadd.f32 %v2196_v50, %v2052_v18 }
 0x20d   :  { %v2198_v53 = vpop.f32.mrf.mxu2 }
 0x20e   :  { %v2245_v1 = vpop.f32.mrf.mxu3 }
 0x20f   :  { %v2007_v44 = vpop.f32.mrf.mxu0  ;;  %v2246_v62 = vadd.f32 %v2245_v1, %v2197_v12 }
 0x210   :  { %v2053_v33 = vpop.f32.mrf.mxu1 }
 0x211   :  { %v2054_v11 = vadd.f32 %v2053_v33, %v2004_v8 }
 0x213   :  { %v2199_v41 = vadd.f32 %v2198_v53, %v2054_v11 }
 0x215   :  { %v2201_v56 = vpop.f32.mrf.mxu2 }
 0x216   :  { %v2247_v10 = vpop.f32.mrf.mxu3 }
 0x217   :  { %v2248_v9 = vadd.f32 %v2247_v10, %v2199_v41  ;;  %v2009_v46 = vpop.f32.mrf.mxu0 }
 0x218   :  { %v2056_v34 = vpop.f32.mrf.mxu1 }
 0x219   :  { %v2945_v0 = vpack.c.bf16 %v2248_v9, %v2246_v62  ;;  %v2057_v14 = vadd.f32 %v2056_v34, %v2007_v44 }
 0x21b   :  { %2977 = vst [vmem:[#allocation15 + $0x8] sm:$0xff] %v2945_v0   ;;  %v2202_v55 = vadd.f32 %v2201_v56, %v2057_v14 }
 0x21d   :  { %v2203_v19 = vpop.f32.mrf.mxu2 }
 0x21e   :  { %v2250_v48 = vpop.f32.mrf.mxu3 }
 0x21f   :  { %v2012_v28 = vpop.f32.mrf.mxu0  ;;  %v2251_v40 = vadd.f32 %v2250_v48, %v2202_v55 }
 0x220   :  { %v2058_v17 = vpop.f32.mrf.mxu1 }
 0x221   :  { %v2059_v24 = vadd.f32 %v2058_v17, %v2009_v46 }
 0x223   :  { %v2204_v21 = vadd.f32 %v2203_v19, %v2059_v24 }
 0x225   :  { %v2206_v54 = vpop.f32.mrf.mxu2 }
 0x226   :  { %v2252_v52 = vpop.f32.mrf.mxu3 }
 0x227   :  { %v2253_v47 = vadd.f32 %v2252_v52, %v2204_v21  ;;  %v2014_v60 = vpop.f32.mrf.mxu0 }
 0x228   :  { %v2061_v45 = vpop.f32.mrf.mxu1 }
 0x229   :  { %v2950_v3 = vpack.c.bf16 %v2253_v47, %v2251_v40  ;;  %v2062_v37 = vadd.f32 %v2061_v45, %v2012_v28 }
 0x22b   :  { %2978 = vst [vmem:[#allocation15 + $0x10] sm:$0xff] %v2950_v3   ;;  %v2207_v36 = vadd.f32 %v2206_v54, %v2062_v37 }
 0x22d   :  { %v2208_v26 = vpop.f32.mrf.mxu2 }
 0x22e   :  { %v2255_v38 = vpop.f32.mrf.mxu3 }
 0x22f   :  { %v2017_v2 = vpop.f32.mrf.mxu0  ;;  %v2256_v30 = vadd.f32 %v2255_v38, %v2207_v36 }
 0x230   :  { %v2063_v39 = vpop.f32.mrf.mxu1 }
 0x231   :  { %v2064_v35 = vadd.f32 %v2063_v39, %v2014_v60 }
 0x233   :  { %v2209_v58 = vadd.f32 %v2208_v26, %v2064_v35 }
 0x236   :  { %v2211_v6 = vpop.f32.mrf.mxu2  ;;  %v2257_v4 = vpop.f32.mrf.mxu3 }
 0x237   :  { %v2258_v61 = vadd.f32 %v2257_v4, %v2209_v58  ;;  %v2019_v31 = vpop.f32.mrf.mxu0 }
 0x238   :  { %v2066_v57 = vpop.f32.mrf.mxu1 }
 0x239   :  { %v2955_v25 = vpack.c.bf16 %v2258_v61, %v2256_v30  ;;  %v2067_v51 = vadd.f32 %v2066_v57, %v2017_v2 }
 0x23b   :  { %2979 = vst [vmem:[#allocation15 + $0x18] sm:$0xff] %v2955_v25   ;;  %v2212_v29 = vadd.f32 %v2211_v6, %v2067_v51 }
 0x23e   :  { %v2213_v63 = vpop.f32.mrf.mxu2  ;;  %v2260_v7 = vpop.f32.mrf.mxu3 }
 0x23f   :  { %v2022_v13 = vpop.f32.mrf.mxu0  ;;  %v2261_v16 = vadd.f32 %v2260_v7, %v2212_v29 }
 0x240   :  { %v2068_v32 = vpop.f32.mrf.mxu1 }
 0x241   :  { %v2069_v43 = vadd.f32 %v2068_v32, %v2019_v31 }
 0x243   :  { %v2214_v20 = vadd.f32 %v2213_v63, %v2069_v43 }
 0x246   :  { %v2216_v59 = vpop.f32.mrf.mxu2  ;;  %v2262_v49 = vpop.f32.mrf.mxu3 }
 0x247   :  { %v2263_v22 = vadd.f32 %v2262_v49, %v2214_v20  ;;  %v2024_v50 = vpop.f32.mrf.mxu0 }
 0x248   :  { %v2071_v15 = vpop.f32.mrf.mxu1 }
 0x249   :  { %v2960_v27 = vpack.c.bf16 %v2263_v22, %v2261_v16  ;;  %v2072_v53 = vadd.f32 %v2071_v15, %v2022_v13 }
 0x24b   :  { %2980 = vst [vmem:[#allocation15 + $0x20] sm:$0xff] %v2960_v27   ;;  %v2217_v44 = vadd.f32 %v2216_v59, %v2072_v53 }
 0x24e   :  { %v2218_v23 = vpop.f32.mrf.mxu2  ;;  %v2265_v8 = vpop.f32.mrf.mxu3 }
 0x24f   :  { %v2027_v5 = vpop.f32.mrf.mxu0  ;;  %v2266_v12 = vadd.f32 %v2265_v8, %v2217_v44 }
 0x250   :  { %v2073_v42 = vpop.f32.mrf.mxu1 }
 0x251   :  { %v2074_v1 = vadd.f32 %v2073_v42, %v2024_v50 }
 0x253   :  { %v2219_v33 = vadd.f32 %v2218_v23, %v2074_v1 }
 0x256   :  { %v2221_v18 = vpop.f32.mrf.mxu2  ;;  %v2267_v11 = vpop.f32.mrf.mxu3 }
 0x257   :  { %v2268_v41 = vadd.f32 %v2267_v11, %v2219_v33  ;;  %v2029_v62 = vpop.f32.mrf.mxu0 }
 0x258   :  { %v2076_v56 = vpop.f32.mrf.mxu1 }
 0x259   :  { %v2965_v10 = vpack.c.bf16 %v2268_v41, %v2266_v12  ;;  %v2077_v0 = vadd.f32 %v2076_v56, %v2027_v5 }
 0x25b   :  { %2981 = vst [vmem:[#allocation15 + $0x28] sm:$0xff] %v2965_v10   ;;  %v2222_v48 = vadd.f32 %v2221_v18, %v2077_v0 }
 0x25e   :  { %v2223_v9 = vpop.f32.mrf.mxu2  ;;  %v2270_v46 = vpop.f32.mrf.mxu3 }
 0x25f   :  { %v2032_v17 = vpop.f32.mrf.mxu0  ;;  %v2271_v55 = vadd.f32 %v2270_v46, %v2222_v48 }
 0x260   :  { %v2078_v34 = vpop.f32.mrf.mxu1 }
 0x261   :  { %v2079_v19 = vadd.f32 %v2078_v34, %v2029_v62 }
 0x263   :  { %v2224_v28 = vadd.f32 %v2223_v9, %v2079_v19 }
 0x266   :  { %v2272_v14 = vpop.f32.mrf.mxu3  ;;  %v2226_v24 = vpop.f32.mrf.mxu2 }
 0x267   :  { %v2273_v21 = vadd.f32 %v2272_v14, %v2224_v28  ;;  %v2034_v47 = vpop.f32.mrf.mxu0 }
 0x268   :  { %v2081_v54 = vpop.f32.mrf.mxu1 }
 0x269   :  { %v2970_v52 = vpack.c.bf16 %v2273_v21, %v2271_v55  ;;  %v2082_v3 = vadd.f32 %v2081_v54, %v2032_v17 }
 0x26b   :  { %2982 = vst [vmem:[#allocation15 + $0x30] sm:$0xff] %v2970_v52   ;;  %v2227_v38 = vadd.f32 %v2226_v24, %v2082_v3 }
 0x26e   :  { %v2275_v40 = vpop.f32.mrf.mxu3  ;;  %v2228_v45 = vpop.f32.mrf.mxu2 }
 0x26f   :  { %v2276_v37 = vadd.f32 %v2275_v40, %v2227_v38 }
 0x270   :  { %v2083_v60 = vpop.f32.mrf.mxu1 }
 0x271   :  { %v2084_v26 = vadd.f32 %v2083_v60, %v2034_v47 }
 0x273   :  { %v2229_v2 = vadd.f32 %v2228_v45, %v2084_v26 }
 0x276   :  { %v2277_v39 = vpop.f32.mrf.mxu3 }
 0x277   :  { %v2278_v35 = vadd.f32 %v2277_v39, %v2229_v2 }
 0x279   :  { %v2975_v36 = vpack.c.bf16 %v2278_v35, %v2276_v37 }
 0x27b   :  { %2983 = vst [vmem:[#allocation15 + $0x38] sm:$0xff] %v2975_v36  }
 0x27c   :  { %2375 = dma.vmem_to_hbm [thread:$0]  %s2368_s11, 1024, %s2370_s14, [#allocation5], %s3325_s9, %s3325_s9, %s3326_s10  }
 0x27d   :  { %3322 = dma.done.wait [#allocation5], 1024  }
 0x27e   :  { %3323 = vsyncadd [#allocation5], 4294966272 }
 0x27f   :  { %2380 = vsyncpa [#allocation4], 1 }
 0x280   :  { %2381 = vsyncpa [#allocation7], 1 }
 0x281   :  { %2382 = vsyncpa [#allocation10], 1 }
 0x282   :  { %2383 = vsyncpa [#allocation13], 1 }
 0x283   :  { %2384 = vsyncpa [#allocation5], 1 }

</bundles_post_ra>
